<compile_context>
chip_gen: v6e
topology: v6e:2x2x1
jax: 0.10.0
libtpu: 0.0.40
codegen_flags: <defaults>
</compile_context>

<pallas_src>
import functools
import math

import jax
import jax.numpy as jnp
from jax.experimental import pallas as pl
from jax.experimental.pallas import tpu as pltpu

EPS = 1e-5
N_ITER = 5
MOMENTUM = 0.1


def _round_up(x, m):
    return ((x + m - 1) // m) * m


def _vmem_limit(needed_bytes):
    # Explicit scoped-VMEM limit: generous margin, but never above v7x's 64 MiB.
    return int(min(max(needed_bytes + (8 << 20), 32 << 20), 64 << 20))


def _plan_stats_tiles(n_rows, block, x_item, mxu_item):
    """Row-tile size for Kernel A under a conservative VMEM budget (v7x-safe)."""
    tn_rows = min(1024, _round_up(max(n_rows, 1), 16))

    def vmem(t):
        return (2 * t * block * x_item            # x block (double-buffered)
                + 2 * block * 4                   # mean out
                + 2 * block * block * 4           # deconv (f32) out
                + 2 * block * block * mxu_item    # deconv (mxu dtype) out
                + block * 4 + block * block * 4   # sum + gram scratch
                + 6 * block * block * 4)          # Newton-Schulz f32 temporaries

    budget = 40 << 20
    while vmem(tn_rows) > budget and tn_rows > 64:
        tn_rows = max(64, _round_up(tn_rows // 2, 16))
    return tn_rows, vmem(tn_rows)


def _plan_linear_tiles(batch, out_features, block, G, x_item, mxu_item, out_item):
    """(tm, tn_out) for Kernel B: big tm for weight-stream arithmetic intensity,
    >= 2 row tiles when batch allows (so the parallel axis spans both v7x cores),
    all under an explicit VMEM budget."""
    if batch >= 32:
        tm = min(512, _round_up((batch + 1) // 2, 16))
    else:
        tm = _round_up(max(batch, 1), 16)
    tn_out = out_features if out_features <= 128 else 256

    def vmem(tm_, tn_):
        return (2 * tm_ * block * x_item          # x block
                + 2 * block * tn_ * mxu_item      # w_t block
                + 2 * block * 4                   # mean
                + 2 * block * block * mxu_item    # deconv
                + 2 * tn_ * 4                     # bias
                + 2 * tm_ * tn_ * out_item        # out block
                + tm_ * tn_ * 4                   # acc scratch
                + G * tm_ * block * mxu_item)     # xd cache

    budget = 40 << 20
    while vmem(tm, tn_out) > budget and tm > 64:
        tm = max(64, _round_up(tm // 2, 16))
    while vmem(tm, tn_out) > budget and tn_out > 128:
        tn_out = max(128, tn_out // 2)
    return tm, tn_out, vmem(tm, tn_out)


# --------------------------------------------------------------------------------
# Kernel A: fused column-mean + Gram + Newton-Schulz inverse square root.
# Grid: (N_pad // tn_rows,) -- reduction over row tiles of X = input.view(-1, block).
# Zero-padded rows contribute 0 to both sum and Gram; division uses the true N.
# Outputs (last step): mean (1,B) f32, deconv (B,B) f32, deconv (B,B) mxu dtype.
# TODO(synk): on v7x split the row reduction over a leading 2-wide "parallel" axis
#             (per-core partial sums) so both TensorCores work during the stats pass.
# --------------------------------------------------------------------------------
def stats_deconv_kernel(x_ref, mean_ref, deconv_ref, deconvc_ref,
                        sum_ref, gram_ref, *, n_rows, n_iter, eps):
    step = pl.program_id(0)

    @pl.when(step == 0)
    def _init():
        sum_ref[...] = jnp.zeros_like(sum_ref)
        gram_ref[...] = jnp.zeros_like(gram_ref)

    x = x_ref[...].astype(jnp.float32)                        # cast in VMEM (x streams native dtype)
    sum_ref[...] += jnp.sum(x, axis=0, keepdims=True)         # (1, B)
    # Gram accumulation (X^T X) in f32 on the MXU.
    gram_ref[...] += jax.lax.dot_general(
        x, x, (((0,), (0,)), ((), ())), preferred_element_type=jnp.float32)

    @pl.when(step == pl.num_programs(0) - 1)
    def _finalize():
        inv_n = jnp.float32(1.0 / n_rows)
        mean = sum_ref[...] * inv_n                           # (1, B)
        blk = mean.shape[1]
        eye = jnp.eye(blk, dtype=jnp.float32)
        # Cov = eps*I + (1/N) Xc^T Xc == eps*I + (1/N) Gram - mean^T mean
        cov = (eps * eye + gram_ref[...] * inv_n
               - jax.lax.dot_general(mean, mean, (((0,), (0,)), ((), ())),
                                     preferred_element_type=jnp.float32))
        norm_a = jnp.sqrt(jnp.sum(cov * cov))
        y = cov / norm_a
        z = eye
        for _ in range(n_iter):                               # static unroll, all f32
            t = 0.5 * (3.0 * eye - jnp.dot(z, y, preferred_element_type=jnp.float32))
            y = jnp.dot(y, t, preferred_element_type=jnp.float32)
            z = jnp.dot(t, z, preferred_element_type=jnp.float32)
        deconv = z / jnp.sqrt(norm_a)                         # symmetric: deconv == deconv^T
        mean_ref[...] = mean
        deconv_ref[...] = deconv
        deconvc_ref[...] = deconv.astype(deconvc_ref.dtype)   # pre-cast for Kernel B


# --------------------------------------------------------------------------------
# Kernel B (G > 1): fused deconv-apply + final linear with f32 accumulator.
#   xd_g = (x_g - mean) @ deconv      (deconv symmetric => acts as deconv^T)
#   y    = sum_g xd_g @ W_g^T + bias
# Grid: (batch//tm, out//tn, G), group axis innermost.  xd is computed once per
# (row-tile, group) when j == 0 and cached in VMEM; the x BlockSpec index is frozen
# for j > 0 so the activation tile is never re-DMAed.
# --------------------------------------------------------------------------------
def deconv_linear_kernel(x_ref, wt_ref, mean_ref, deconv_ref, b_ref, o_ref,
                         acc_ref, xd_ref):
    j = pl.program_id(1)
    g = pl.program_id(2)
    cdtype = xd_ref.dtype                                     # MXU operand dtype

    @pl.when(g == 0)
    def _init():
        acc_ref[...] = jnp.zeros_like(acc_ref)

    @pl.when(j == 0)
    def _apply_deconv():
        xc = x_ref[...].astype(jnp.float32) - mean_ref[...]   # (tm, B)
        xd = jax.lax.dot_general(                             # xc @ deconv
            xc.astype(cdtype), deconv_ref[...],
            (((1,), (0,)), ((), ())), preferred_element_type=jnp.float32)
        xd_ref[g] = xd.astype(cdtype)

    acc_ref[...] += jax.lax.dot_general(
        xd_ref[g], wt_ref[...], (((1,), (0,)), ((), ())),
        preferred_element_type=jnp.float32)

    @pl.when(g == pl.num_programs(2) - 1)
    def _finalize():
        o_ref[...] = (acc_ref[...] + b_ref[...]).astype(o_ref.dtype)


# --------------------------------------------------------------------------------
# Kernel B (G == 1): no accumulator round-trip — write the output tile directly.
# --------------------------------------------------------------------------------
def deconv_linear_kernel_g1(x_ref, wt_ref, mean_ref, deconv_ref, b_ref, o_ref,
                            xd_ref):
    j = pl.program_id(1)
    cdtype = xd_ref.dtype

    @pl.when(j == 0)
    def _apply_deconv():
        xc = x_ref[...].astype(jnp.float32) - mean_ref[...]
        xd = jax.lax.dot_general(
            xc.astype(cdtype), deconv_ref[...],
            (((1,), (0,)), ((), ())), preferred_element_type=jnp.float32)
        xd_ref[...] = xd.astype(cdtype)

    o_ref[...] = (jax.lax.dot_general(
        xd_ref[...], wt_ref[...], (((1,), (0,)), ((), ())),
        preferred_element_type=jnp.float32) + b_ref[...]).astype(o_ref.dtype)


def prepare_delinear_weight(weight, mxu_dtype=jnp.bfloat16):
    """Pre-transposed, pre-cast (in, out) weight. Hoist/cache this across steps so the
    transpose+cast HBM traffic is not paid on every forward."""
    return weight.T.astype(mxu_dtype)


# --------------------------------------------------------------------------------
# Wrapper
# --------------------------------------------------------------------------------
def delinear_forward(x, weight, bias, running_mean, running_deconv, block,
                     training=True, eps=EPS, n_iter=N_ITER, momentum=MOMENTUM,
                     mxu_dtype=jnp.bfloat16, weight_t=None):
    batch, in_features = x.shape
    out_features = weight.shape[0]
    G = in_features // block
    x_item = x.dtype.itemsize
    mxu_item = jnp.dtype(mxu_dtype).itemsize

    bias_vec = (bias if bias is not None
                else jnp.zeros((out_features,), jnp.float32)).astype(jnp.float32)

    # ---------------- Stats + inverse-sqrt (training) ----------------
    if training:
        X = x.reshape(-1, block)                              # (N, block), native dtype
        N = X.shape[0]
        tn_rows, vmem_a = _plan_stats_tiles(N, block, X.dtype.itemsize, mxu_item)
        N_pad = _round_up(N, tn_rows)
        if N_pad != N:
            X = jnp.pad(X, ((0, N_pad - N), (0, 0)))          # zero rows: exact no-op for sum/Gram
        kernel_a = functools.partial(stats_deconv_kernel, n_rows=N,
                                     n_iter=n_iter, eps=eps)
        mean2d, deconv_f32, deconv_c = pl.pallas_call(
            kernel_a,
            grid_spec=pltpu.PrefetchScalarGridSpec(
                num_scalar_prefetch=0,
                grid=(N_pad // tn_rows,),
                in_specs=[pl.BlockSpec((tn_rows, block), lambda i: (i, 0))],
                out_specs=(pl.BlockSpec((1, block), lambda i: (0, 0)),
                           pl.BlockSpec((block, block), lambda i: (0, 0)),
                           pl.BlockSpec((block, block), lambda i: (0, 0))),
                scratch_shapes=[pltpu.VMEM((1, block), jnp.float32),
                                pltpu.VMEM((block, block), jnp.float32)]),
            out_shape=(jax.ShapeDtypeStruct((1, block), jnp.float32),
                       jax.ShapeDtypeStruct((block, block), jnp.float32),
                       jax.ShapeDtypeStruct((block, block), mxu_dtype)),
            compiler_params=pltpu.CompilerParams(
                dimension_semantics=("arbitrary",),
                vmem_limit_bytes=_vmem_limit(vmem_a)),
            cost_estimate=pl.CostEstimate(
                flops=2 * N_pad * block * block + 6 * n_iter * block ** 3,
                transcendentals=0,
                bytes_accessed=X.dtype.itemsize * N_pad * block
                               + 4 * (block + block * block)
                               + mxu_item * block * block),
        )(X)
        # Running-buffer EMA updates (plain JAX; matches the torch buffers).
        new_running_mean = (1.0 - momentum) * running_mean + momentum * mean2d[0]
        new_running_deconv = (1.0 - momentum) * running_deconv + momentum * deconv_f32
        deconv_apply_f32 = deconv_f32                          # symmetric: == deconv^T
        deconv_apply = deconv_c
    else:
        mean2d = running_mean.astype(jnp.float32)[None, :]
        deconv_apply_f32 = running_deconv.astype(jnp.float32).T
        deconv_apply = deconv_apply_f32.astype(mxu_dtype)
        new_running_mean = running_mean
        new_running_deconv = running_deconv

    if G > 1 and block % 128 != 0:
        # TODO(synk): degenerate gcd block (<128 lanes with multiple groups) needs a
        # lane-padded kernel; fall back to plain JAX for this rare configuration.
        Xall = x.reshape(-1, block).astype(jnp.float32)
        xd = (Xall - mean2d) @ deconv_apply_f32
        y = (xd.reshape(batch, in_features) @ weight.T.astype(jnp.float32)
             + bias_vec[None, :])
        return y.astype(x.dtype), new_running_mean, new_running_deconv

    # ---------------- Fused deconv-apply + linear ----------------
    tm, tn_out, vmem_b = _plan_linear_tiles(batch, out_features, block, G,
                                            x_item, mxu_item, x_item)
    batch_pad = _round_up(batch, tm)
    out_pad = _round_up(out_features, tn_out)

    x_in = x if batch_pad == batch else jnp.pad(x, ((0, batch_pad - batch), (0, 0)))

    # Pre-transposed / pre-cast weight: prefer a cached copy passed in via `weight_t`.
    w_t = weight_t if weight_t is not None else weight.T.astype(mxu_dtype)
    w_t = w_t.astype(mxu_dtype)
    if out_pad != out_features:
        w_t = jnp.pad(w_t, ((0, 0), (0, out_pad - out_features)))
        bias_vec = jnp.pad(bias_vec, (0, out_pad - out_features))
    bias2d = bias_vec[None, :]                                # (1, out_pad), lane-dense

    common_params = dict(
        out_shape=jax.ShapeDtypeStruct((batch_pad, out_pad), x.dtype),
        cost_estimate=pl.CostEstimate(
            flops=2 * batch_pad * in_features * out_pad
                  + 2 * batch_pad * in_features * block,
            transcendentals=0,
            bytes_accessed=x_item * batch_pad * in_features
                           + mxu_item * in_features * out_pad
                           + x_item * batch_pad * out_pad
                           + mxu_item * block * block),
    )

    if G == 1:
        y_full = pl.pallas_call(
            deconv_linear_kernel_g1,
            grid_spec=pltpu.PrefetchScalarGridSpec(
                num_scalar_prefetch=0,
                grid=(batch_pad // tm, out_pad // tn_out),
                in_specs=[pl.BlockSpec((tm, block), lambda i, j: (i, 0)),       # x
                          pl.BlockSpec((block, tn_out), lambda i, j: (0, j)),   # W^T
                          pl.BlockSpec((1, block), lambda i, j: (0, 0)),        # mean
                          pl.BlockSpec((block, block), lambda i, j: (0, 0)),    # deconv
                          pl.BlockSpec((1, tn_out), lambda i, j: (0, j))],      # bias
                out_specs=pl.BlockSpec((tm, tn_out), lambda i, j: (i, j)),
                scratch_shapes=[pltpu.VMEM((tm, block), mxu_dtype)]),           # xd cache
            compiler_params=pltpu.CompilerParams(
                # j must be "arbitrary": the xd cache is filled on j == 0.
                dimension_semantics=("parallel", "arbitrary"),
                vmem_limit_bytes=_vmem_limit(vmem_b)),
            **common_params,
        )(x_in, w_t, mean2d, deconv_apply, bias2d)
    else:
        # x index is frozen at (i, G-1) for j > 0: same block index => no re-DMA.
        x_index_map = lambda i, j, g: (i, jnp.where(j == 0, g, G - 1))
        y_full = pl.pallas_call(
            deconv_linear_kernel,
            grid_spec=pltpu.PrefetchScalarGridSpec(
                num_scalar_prefetch=0,
                grid=(batch_pad // tm, out_pad // tn_out, G),
                in_specs=[pl.BlockSpec((tm, block), x_index_map),                  # x
                          pl.BlockSpec((block, tn_out), lambda i, j, g: (g, j)),   # W^T
                          pl.BlockSpec((1, block), lambda i, j, g: (0, 0)),        # mean
                          pl.BlockSpec((block, block), lambda i, j, g: (0, 0)),    # deconv
                          pl.BlockSpec((1, tn_out), lambda i, j, g: (0, j))],      # bias
                out_specs=pl.BlockSpec((tm, tn_out), lambda i, j, g: (i, j)),
                scratch_shapes=[pltpu.VMEM((tm, tn_out), jnp.float32),             # acc
                                pltpu.VMEM((G, tm, block), mxu_dtype)]),           # xd cache
            compiler_params=pltpu.CompilerParams(
                dimension_semantics=("parallel", "arbitrary", "arbitrary"),
                vmem_limit_bytes=_vmem_limit(vmem_b)),
            **common_params,
        )(x_in, w_t, mean2d, deconv_apply, bias2d)

    y = y_full
    if batch_pad != batch or out_pad != out_features:
        y = y[:batch, :out_features]
    return y, new_running_mean, new_running_deconv


# --------------------------------------------------------------------------------
# Pure-JAX reference (mirrors the PyTorch module exactly; weight-side deconvolution)
# --------------------------------------------------------------------------------
def delinear_reference(x, weight, bias, block, eps=EPS, n_iter=N_ITER):
    X = x.reshape(-1, block)
    N = X.shape[0]
    mean = X.mean(0)
    Xc = X - mean[None, :]
    cov = eps * jnp.eye(block, dtype=x.dtype) + (1.0 / N) * (Xc.T @ Xc)
    normA = jnp.sqrt(jnp.sum(cov * cov))
    Y = cov / normA
    I = jnp.eye(block, dtype=x.dtype)
    Z = I
    for _ in range(n_iter):
        T = 0.5 * (3.0 * I - Z @ Y)
        Y = Y @ T
        Z = T @ Z
    deconv = Z / jnp.sqrt(normA)
    w = weight.reshape(-1, block) @ deconv
    b0 = bias if bias is not None else 0.0
    b = b0 - (w @ mean[:, None]).reshape(weight.shape[0], -1).sum(1)
    w = w.reshape(weight.shape)
    return x @ w.T + b[None, :], mean, deconv


if __name__ == "__main__":
    def module_block(in_features, block):
        if block > in_features:
            return in_features
        if in_features % block != 0:
            return math.gcd(block, in_features)
        return block

    def make_inputs(key, batch, in_features, out_features):
        k1, k2, k3 = jax.random.split(key, 3)
        bound = 1.0 / math.sqrt(in_features)   # kaiming_uniform_(a=sqrt(5)) on 2-D weight
        weight = jax.random.uniform(k1, (out_features, in_features), jnp.float32,
                                    -bound, bound)
        bias = jax.random.uniform(k2, (out_features,), jnp.float32, -bound, bound)
        x = jax.random.normal(k3, (batch, in_features), jnp.float32)
        return weight, bias, x

    key = jax.random.PRNGKey(0)
    key_cfg1, key_cfg2 = jax.random.split(key)

    # --- Config 1: block clipped to in_features (G == 1) --------------------------
    batch, in_f, out_f = 8, 128, 64
    block = module_block(in_f, 512)                        # -> 128, G == 1
    weight, bias, x = make_inputs(key_cfg1, batch, in_f, out_f)
    running_mean = jnp.zeros((block,), jnp.float32)
    running_deconv = jnp.eye(block, dtype=jnp.float32)

    y_ref, mean_v, deconv_v = delinear_reference(x, weight, bias, block)
    rm_ref = (1.0 - MOMENTUM) * running_mean + MOMENTUM * mean_v
    rd_ref = (1.0 - MOMENTUM) * running_deconv + MOMENTUM * deconv_v

    # f32 MXU path: tight check against the PyTorch-equivalent reference.
    w_t32 = prepare_delinear_weight(weight, jnp.float32)   # hoisted transpose/cast
    y32, rm, rd = delinear_forward(x, weight, bias, running_mean, running_deconv,
                                   block, training=True, mxu_dtype=jnp.float32,
                                   weight_t=w_t32)
    jax.block_until_ready((y32, rm, rd))
    assert y32.shape == (batch, out_f)
    assert jnp.allclose(y32, y_ref, rtol=2e-3, atol=2e-3), "cfg1 f32 output mismatch"
    assert jnp.allclose(rm, rm_ref, rtol=1e-3, atol=1e-3), "cfg1 running_mean mismatch"
    assert jnp.allclose(rd, rd_ref, rtol=1e-3, atol=1e-3), "cfg1 running_deconv mismatch"

    # bf16 MXU path (default fast path): looser tolerance.
    w_tbf = prepare_delinear_weight(weight, jnp.bfloat16)
    ybf, _, _ = delinear_forward(x, weight, bias, running_mean, running_deconv,
                                 block, training=True, mxu_dtype=jnp.bfloat16,
                                 weight_t=w_tbf)
    jax.block_until_ready(ybf)
    assert jnp.allclose(ybf, y_ref, rtol=5e-2, atol=5e-2), "cfg1 bf16 output mismatch"

    # Eval path: buffers are (0, I) so the result is a plain linear layer.
    y_ev, _, _ = delinear_forward(x, weight, bias, running_mean, running_deconv,
                                  block, training=False, mxu_dtype=jnp.float32,
                                  weight_t=w_t32)
    jax.block_until_ready(y_ev)
    y_ev_ref = x @ weight.T + bias[None, :]
    assert jnp.allclose(y_ev, y_ev_ref, rtol=2e-3, atol=2e-3), "cfg1 eval mismatch"

    # --- Config 2: G == 2 (block=128, in=256), out not a multiple of 128 ----------
    batch2, in_f2, out_f2 = 16, 256, 192
    block2 = module_block(in_f2, 128)                      # -> 128, G == 2
    weight2, bias2, x2 = make_inputs(key_cfg2, batch2, in_f2, out_f2)
    rm2 = jnp.zeros((block2,), jnp.float32)
    rd2 = jnp.eye(block2, dtype=jnp.float32)
    y2_ref, _, _ = delinear_reference(x2, weight2, bias2, block2)
    y2, _, _ = delinear_forward(x2, weight2, bias2, rm2, rd2, block2,
                                training=True, mxu_dtype=jnp.float32)
    jax.block_until_ready(y2)
    assert y2.shape == (batch2, out_f2)
    assert jnp.allclose(y2, y2_ref, rtol=5e-3, atol=5e-3), "cfg2 f32 output mismatch"

    print("KERNEL_OK")
</pallas_src>

<mosaic_0001>
module attributes {stable_mosaic.version = 11 : i64} {
  func.func @stats_deconv_kernel(%arg0: i32, %arg1: memref<16x128xf32, #tpu.memory_space<vmem>>, %arg2: memref<1x128xf32, #tpu.memory_space<vmem>>, %arg3: memref<128x128xf32, #tpu.memory_space<vmem>>, %arg4: memref<128x128xf32, #tpu.memory_space<vmem>>, %arg5: memref<1x128xf32, #tpu.memory_space<vmem>>, %arg6: memref<128x128xf32, #tpu.memory_space<vmem>>) attributes {dimension_semantics = [#tpu.dimension_semantics<arbitrary>], iteration_bounds = array<i64: 1>, scalar_prefetch = 0 : i64, scratch_operands = 2 : i64, tpu.core_type = #tpu.core_type<tc>, window_params = [{transform_indices = @transform_0, window_bounds = array<i64: 16, 128>}, {pipeline_mode = #tpu.pipeline_mode<synchronous>, transform_indices = @transform_1, window_bounds = array<i64: 1, 128>}, {pipeline_mode = #tpu.pipeline_mode<synchronous>, transform_indices = @transform_2, window_bounds = array<i64: 128, 128>}, {pipeline_mode = #tpu.pipeline_mode<synchronous>, transform_indices = @transform_3, window_bounds = array<i64: 128, 128>}]} {
    %c0_i32 = arith.constant 0 : i32
    %0 = arith.cmpi eq, %arg0, %c0_i32 : i32
    %1 = arith.extui %0 : i1 to i32
    %c0_i32_0 = arith.constant 0 : i32
    %2 = arith.cmpi ne, %1, %c0_i32_0 : i32
    scf.if %2 {
      %cst_13 = arith.constant 0.000000e+00 : f32
      %16 = vector.broadcast %cst_13 : f32 to vector<1x128xf32>
      %c0_14 = arith.constant 0 : index
      %c0_15 = arith.constant 0 : index
      %17 = vector.load %arg5[%c0_14, %c0_15] : memref<1x128xf32, #tpu.memory_space<vmem>>, vector<1x128xf32>
      tpu.vector_store %arg5[%c0_14, %c0_15], %16 {strides = array<i32>} : memref<1x128xf32, #tpu.memory_space<vmem>>, vector<1x128xf32>,
      %cst_16 = arith.constant 0.000000e+00 : f32
      %18 = vector.broadcast %cst_16 : f32 to vector<128x128xf32>
      %c0_17 = arith.constant 0 : index
      %c0_18 = arith.constant 0 : index
      %19 = vector.load %arg6[%c0_17, %c0_18] : memref<128x128xf32, #tpu.memory_space<vmem>>, vector<128x128xf32>
      tpu.vector_store %arg6[%c0_17, %c0_18], %18 {strides = array<i32>} : memref<128x128xf32, #tpu.memory_space<vmem>>, vector<128x128xf32>,
    } else {
    }
    %c0 = arith.constant 0 : index
    %c0_1 = arith.constant 0 : index
    %3 = vector.load %arg1[%c0, %c0_1] : memref<16x128xf32, #tpu.memory_space<vmem>>, vector<16x128xf32>
    %c0_2 = arith.constant 0 : index
    %c0_3 = arith.constant 0 : index
    %4 = vector.load %arg5[%c0_2, %c0_3] : memref<1x128xf32, #tpu.memory_space<vmem>>, vector<1x128xf32>
    %cst = arith.constant dense<0.000000e+00> : vector<128xf32>
    %5 = vector.multi_reduction <add>, %3, %cst [0] : vector<16x128xf32> to vector<128xf32>
    %6 = vector.shape_cast %5 : vector<128xf32> to vector<1x128xf32>
    %7 = arith.addf %4, %6 : vector<1x128xf32>
    %c0_4 = arith.constant 0 : index
    %c0_5 = arith.constant 0 : index
    %8 = vector.load %arg5[%c0_4, %c0_5] : memref<1x128xf32, #tpu.memory_space<vmem>>, vector<1x128xf32>
    tpu.vector_store %arg5[%c0_4, %c0_5], %7 {strides = array<i32>} : memref<1x128xf32, #tpu.memory_space<vmem>>, vector<1x128xf32>,
    %c0_6 = arith.constant 0 : index
    %c0_7 = arith.constant 0 : index
    %9 = vector.load %arg6[%c0_6, %c0_7] : memref<128x128xf32, #tpu.memory_space<vmem>>, vector<128x128xf32>
    %cst_8 = arith.constant dense<0.000000e+00> : vector<128x128xf32>
    %10 = tpu.matmul %3, %3, %cst_8 {dimension_numbers = #tpu.dot_dimension_numbers<[0], [0], [1], [1], [0, 1, 1, 1], [], []>} : vector<16x128xf32>, vector<16x128xf32>, vector<128x128xf32> -> vector<128x128xf32>
    %11 = arith.addf %9, %10 : vector<128x128xf32>
    %c0_9 = arith.constant 0 : index
    %c0_10 = arith.constant 0 : index
    %12 = vector.load %arg6[%c0_9, %c0_10] : memref<128x128xf32, #tpu.memory_space<vmem>>, vector<128x128xf32>
    tpu.vector_store %arg6[%c0_9, %c0_10], %11 {strides = array<i32>} : memref<128x128xf32, #tpu.memory_space<vmem>>, vector<128x128xf32>,
    %c0_i32_11 = arith.constant 0 : i32
    %13 = arith.cmpi eq, %arg0, %c0_i32_11 : i32
    %14 = arith.extui %13 : i1 to i32
    %c0_i32_12 = arith.constant 0 : i32
    %15 = arith.cmpi ne, %14, %c0_i32_12 : i32
    scf.if %15 {
      %c0_13 = arith.constant 0 : index
      %c0_14 = arith.constant 0 : index
      %16 = vector.load %arg5[%c0_13, %c0_14] : memref<1x128xf32, #tpu.memory_space<vmem>>, vector<1x128xf32>
      %cst_15 = arith.constant 1.250000e-01 : f32
      %17 = vector.broadcast %cst_15 : f32 to vector<1x128xf32>
      %18 = arith.mulf %16, %17 : vector<1x128xf32>
      %19 = tpu.iota {dimensions = array<i32: 0>} : vector<128x128xi32>
      %20 = tpu.iota {dimensions = array<i32: 1>} : vector<128x128xi32>
      %c0_i32_16 = arith.constant 0 : i32
      %21 = vector.broadcast %c0_i32_16 : i32 to vector<128x128xi32>
      %22 = arith.addi %19, %21 : vector<128x128xi32>
      %23 = arith.cmpi eq, %22, %20 : vector<128x128xi32>
      %24 = arith.extui %23 : vector<128x128xi1> to vector<128x128xi32>
      %25 = arith.sitofp %24 : vector<128x128xi32> to vector<128x128xf32>
      %cst_17 = arith.constant 9.99999974E-6 : f32
      %26 = vector.broadcast %cst_17 : f32 to vector<128x128xf32>
      %27 = arith.mulf %26, %25 : vector<128x128xf32>
      %c0_18 = arith.constant 0 : index
      %c0_19 = arith.constant 0 : index
      %28 = vector.load %arg6[%c0_18, %c0_19] : memref<128x128xf32, #tpu.memory_space<vmem>>, vector<128x128xf32>
      %cst_20 = arith.constant 1.250000e-01 : f32
      %29 = vector.broadcast %cst_20 : f32 to vector<128x128xf32>
      %30 = arith.mulf %28, %29 : vector<128x128xf32>
      %31 = arith.addf %27, %30 : vector<128x128xf32>
      %cst_21 = arith.constant dense<0.000000e+00> : vector<128x128xf32>
      %32 = tpu.matmul %18, %18, %cst_21 {dimension_numbers = #tpu.dot_dimension_numbers<[0], [0], [1], [1], [0, 1, 1, 1], [], []>} : vector<1x128xf32>, vector<1x128xf32>, vector<128x128xf32> -> vector<128x128xf32>
      %33 = arith.subf %31, %32 : vector<128x128xf32>
      %34 = arith.mulf %33, %33 : vector<128x128xf32>
      %35 = vector.shape_cast %34 : vector<128x128xf32> to vector<1x128x128xf32>
      %cst_22 = arith.constant dense<0.000000e+00> : vector<1xf32>
      %36 = vector.multi_reduction <add>, %35, %cst_22 [1, 2] : vector<1x128x128xf32> to vector<1xf32>
      %37 = vector.shape_cast %36 : vector<1xf32> to vector<1x1x1xf32>
      %38 = vector.extract %37[0, 0, 0] : f32 from vector<1x1x1xf32>
      %39 = math.sqrt %38 : f32
      %40 = vector.broadcast %39 : f32 to vector<128x128xf32>
      %41 = arith.divf %33, %40 : vector<128x128xf32>
      %cst_23 = arith.constant 3.000000e+00 : f32
      %42 = vector.broadcast %cst_23 : f32 to vector<128x128xf32>
      %43 = arith.mulf %42, %25 : vector<128x128xf32>
      %cst_24 = arith.constant dense<0.000000e+00> : vector<128x128xf32>
      %44 = tpu.matmul %25, %41, %cst_24 {dimension_numbers = #tpu.dot_dimension_numbers<[1], [0], [0], [1], [0, 0, 1, 1], [], []>} : vector<128x128xf32>, vector<128x128xf32>, vector<128x128xf32> -> vector<128x128xf32>
      %45 = arith.subf %43, %44 : vector<128x128xf32>
      %cst_25 = arith.constant 5.000000e-01 : f32
      %46 = vector.broadcast %cst_25 : f32 to vector<128x128xf32>
      %47 = arith.mulf %46, %45 : vector<128x128xf32>
      %cst_26 = arith.constant dense<0.000000e+00> : vector<128x128xf32>
      %48 = tpu.matmul %41, %47, %cst_26 {dimension_numbers = #tpu.dot_dimension_numbers<[1], [0], [0], [1], [0, 0, 1, 1], [], []>} : vector<128x128xf32>, vector<128x128xf32>, vector<128x128xf32> -> vector<128x128xf32>
      %cst_27 = arith.constant dense<0.000000e+00> : vector<128x128xf32>
      %49 = tpu.matmul %47, %25, %cst_27 {dimension_numbers = #tpu.dot_dimension_numbers<[1], [0], [0], [1], [0, 0, 1, 1], [], []>} : vector<128x128xf32>, vector<128x128xf32>, vector<128x128xf32> -> vector<128x128xf32>
      %cst_28 = arith.constant 3.000000e+00 : f32
      %50 = vector.broadcast %cst_28 : f32 to vector<128x128xf32>
      %51 = arith.mulf %50, %25 : vector<128x128xf32>
      %cst_29 = arith.constant dense<0.000000e+00> : vector<128x128xf32>
      %52 = tpu.matmul %49, %48, %cst_29 {dimension_numbers = #tpu.dot_dimension_numbers<[1], [0], [0], [1], [0, 0, 1, 1], [], []>} : vector<128x128xf32>, vector<128x128xf32>, vector<128x128xf32> -> vector<128x128xf32>
      %53 = arith.subf %51, %52 : vector<128x128xf32>
      %cst_30 = arith.constant 5.000000e-01 : f32
      %54 = vector.broadcast %cst_30 : f32 to vector<128x128xf32>
      %55 = arith.mulf %54, %53 : vector<128x128xf32>
      %cst_31 = arith.constant dense<0.000000e+00> : vector<128x128xf32>
      %56 = tpu.matmul %48, %55, %cst_31 {dimension_numbers = #tpu.dot_dimension_numbers<[1], [0], [0], [1], [0, 0, 1, 1], [], []>} : vector<128x128xf32>, vector<128x128xf32>, vector<128x128xf32> -> vector<128x128xf32>
      %cst_32 = arith.constant dense<0.000000e+00> : vector<128x128xf32>
      %57 = tpu.matmul %55, %49, %cst_32 {dimension_numbers = #tpu.dot_dimension_numbers<[1], [0], [0], [1], [0, 0, 1, 1], [], []>} : vector<128x128xf32>, vector<128x128xf32>, vector<128x128xf32> -> vector<128x128xf32>
      %cst_33 = arith.constant 3.000000e+00 : f32
      %58 = vector.broadcast %cst_33 : f32 to vector<128x128xf32>
      %59 = arith.mulf %58, %25 : vector<128x128xf32>
      %cst_34 = arith.constant dense<0.000000e+00> : vector<128x128xf32>
      %60 = tpu.matmul %57, %56, %cst_34 {dimension_numbers = #tpu.dot_dimension_numbers<[1], [0], [0], [1], [0, 0, 1, 1], [], []>} : vector<128x128xf32>, vector<128x128xf32>, vector<128x128xf32> -> vector<128x128xf32>
      %61 = arith.subf %59, %60 : vector<128x128xf32>
      %cst_35 = arith.constant 5.000000e-01 : f32
      %62 = vector.broadcast %cst_35 : f32 to vector<128x128xf32>
      %63 = arith.mulf %62, %61 : vector<128x128xf32>
      %cst_36 = arith.constant dense<0.000000e+00> : vector<128x128xf32>
      %64 = tpu.matmul %56, %63, %cst_36 {dimension_numbers = #tpu.dot_dimension_numbers<[1], [0], [0], [1], [0, 0, 1, 1], [], []>} : vector<128x128xf32>, vector<128x128xf32>, vector<128x128xf32> -> vector<128x128xf32>
      %cst_37 = arith.constant dense<0.000000e+00> : vector<128x128xf32>
      %65 = tpu.matmul %63, %57, %cst_37 {dimension_numbers = #tpu.dot_dimension_numbers<[1], [0], [0], [1], [0, 0, 1, 1], [], []>} : vector<128x128xf32>, vector<128x128xf32>, vector<128x128xf32> -> vector<128x128xf32>
      %cst_38 = arith.constant 3.000000e+00 : f32
      %66 = vector.broadcast %cst_38 : f32 to vector<128x128xf32>
      %67 = arith.mulf %66, %25 : vector<128x128xf32>
      %cst_39 = arith.constant dense<0.000000e+00> : vector<128x128xf32>
      %68 = tpu.matmul %65, %64, %cst_39 {dimension_numbers = #tpu.dot_dimension_numbers<[1], [0], [0], [1], [0, 0, 1, 1], [], []>} : vector<128x128xf32>, vector<128x128xf32>, vector<128x128xf32> -> vector<128x128xf32>
      %69 = arith.subf %67, %68 : vector<128x128xf32>
      %cst_40 = arith.constant 5.000000e-01 : f32
      %70 = vector.broadcast %cst_40 : f32 to vector<128x128xf32>
      %71 = arith.mulf %70, %69 : vector<128x128xf32>
      %cst_41 = arith.constant dense<0.000000e+00> : vector<128x128xf32>
      %72 = tpu.matmul %64, %71, %cst_41 {dimension_numbers = #tpu.dot_dimension_numbers<[1], [0], [0], [1], [0, 0, 1, 1], [], []>} : vector<128x128xf32>, vector<128x128xf32>, vector<128x128xf32> -> vector<128x128xf32>
      %cst_42 = arith.constant dense<0.000000e+00> : vector<128x128xf32>
      %73 = tpu.matmul %71, %65, %cst_42 {dimension_numbers = #tpu.dot_dimension_numbers<[1], [0], [0], [1], [0, 0, 1, 1], [], []>} : vector<128x128xf32>, vector<128x128xf32>, vector<128x128xf32> -> vector<128x128xf32>
      %cst_43 = arith.constant 3.000000e+00 : f32
      %74 = vector.broadcast %cst_43 : f32 to vector<128x128xf32>
      %75 = arith.mulf %74, %25 : vector<128x128xf32>
      %cst_44 = arith.constant dense<0.000000e+00> : vector<128x128xf32>
      %76 = tpu.matmul %73, %72, %cst_44 {dimension_numbers = #tpu.dot_dimension_numbers<[1], [0], [0], [1], [0, 0, 1, 1], [], []>} : vector<128x128xf32>, vector<128x128xf32>, vector<128x128xf32> -> vector<128x128xf32>
      %77 = arith.subf %75, %76 : vector<128x128xf32>
      %cst_45 = arith.constant 5.000000e-01 : f32
      %78 = vector.broadcast %cst_45 : f32 to vector<128x128xf32>
      %79 = arith.mulf %78, %77 : vector<128x128xf32>
      %cst_46 = arith.constant dense<0.000000e+00> : vector<128x128xf32>
      %80 = tpu.matmul %79, %73, %cst_46 {dimension_numbers = #tpu.dot_dimension_numbers<[1], [0], [0], [1], [0, 0, 1, 1], [], []>} : vector<128x128xf32>, vector<128x128xf32>, vector<128x128xf32> -> vector<128x128xf32>
      %81 = math.sqrt %39 : f32
      %82 = vector.broadcast %81 : f32 to vector<128x128xf32>
      %83 = arith.divf %80, %82 : vector<128x128xf32>
      %c0_47 = arith.constant 0 : index
      %c0_48 = arith.constant 0 : index
      %84 = vector.load %arg2[%c0_47, %c0_48] : memref<1x128xf32, #tpu.memory_space<vmem>>, vector<1x128xf32>
      tpu.vector_store %arg2[%c0_47, %c0_48], %18 {strides = array<i32>} : memref<1x128xf32, #tpu.memory_space<vmem>>, vector<1x128xf32>,
      %c0_49 = arith.constant 0 : index
      %c0_50 = arith.constant 0 : index
      %85 = vector.load %arg3[%c0_49, %c0_50] : memref<128x128xf32, #tpu.memory_space<vmem>>, vector<128x128xf32>
      tpu.vector_store %arg3[%c0_49, %c0_50], %83 {strides = array<i32>} : memref<128x128xf32, #tpu.memory_space<vmem>>, vector<128x128xf32>,
      %c0_51 = arith.constant 0 : index
      %c0_52 = arith.constant 0 : index
      %86 = vector.load %arg4[%c0_51, %c0_52] : memref<128x128xf32, #tpu.memory_space<vmem>>, vector<128x128xf32>
      tpu.vector_store %arg4[%c0_51, %c0_52], %83 {strides = array<i32>} : memref<128x128xf32, #tpu.memory_space<vmem>>, vector<128x128xf32>,
    } else {
    }
    return
  }
  func.func @transform_0(%arg0: i32) -> (i32, i32) {
    %c0_i32 = arith.constant 0 : i32
    %c0_i32_0 = arith.constant 0 : i32
    return %arg0, %c0_i32 : i32, i32
  }
  func.func @transform_1(%arg0: i32) -> (i32, i32) {
    %c0_i32 = arith.constant 0 : i32
    %c0_i32_0 = arith.constant 0 : i32
    %c0_i32_1 = arith.constant 0 : i32
    return %c0_i32, %c0_i32_0 : i32, i32
  }
  func.func @transform_2(%arg0: i32) -> (i32, i32) {
    %c0_i32 = arith.constant 0 : i32
    %c0_i32_0 = arith.constant 0 : i32
    %c0_i32_1 = arith.constant 0 : i32
    return %c0_i32, %c0_i32_0 : i32, i32
  }
  func.func @transform_3(%arg0: i32) -> (i32, i32) {
    %c0_i32 = arith.constant 0 : i32
    %c0_i32_0 = arith.constant 0 : i32
    %c0_i32_1 = arith.constant 0 : i32
    return %c0_i32, %c0_i32_0 : i32, i32
  }
}

</mosaic_0001>

<bundles_post_ra>
// kernel: tpu_custom_call.1
= control target key start
LH: loop header
LB: loop body
LE: loop exit
PB: predicated region body
PF: predicated region fallthrough
CT: control target
= control target key end

     0   :  { %9 = vsyncpa [#allocation5], 0  ;;  %s5883_s0 = inlined_call_operand.hbm [shape: f32[16,128], index: 0, kind: input, shape index: {}]   ;;  %s5884_s1 = inlined_call_operand.hbm [shape: f32[1,128], index: 1, kind: output, shape index: {0}]   ;;  %s5885_s2 = inlined_call_operand.hbm [shape: f32[128,128], index: 2, kind: output, shape index: {1}]   ;;  %s5886_s3 = inlined_call_operand.hbm [shape: f32[128,128], index: 3, kind: output, shape index: {2}]  }
   0x1   :  { %10 = vsyncpa [#allocation6], 0 }
   0x2   :  { %11 = vsyncpa [#allocation9], 0  ;;  %s4605_s12 = smov [#allocation4]  }
   0x3   :  { %s17_s13 = sshll.u32 %s4605_s12, 4  ;;  %s18_s13 = int_to_ptr.vmem [resolvable:$true] %s17_s13 }
   0x4   :  { %s4527_s14 = scalar_lea.vmem %s18_s13, 256  ;;  %p4532_p1 = scmp.lt.s32.totalorder %s18_s13, %s18_s13 }
   0x5   :  { %p4528_p0 = scmp.ne.s32.totalorder %s18_s13, %s4527_s14  ;;  %p4533_p2 = scmp.lt.s32.totalorder %s4527_s14, %s4527_s14 }
   0x7   :  { %p4534_p3 = por %p4533_p2, %p4532_p1 }
   0x9   :  { %p4535_p4 = pnand %p4534_p3, %p4528_p0 }
   0xb   :  { %4538 = shalt.err (!%p4535_p4)
}
   0xc   :  { %s4606_s15 = smov 128   ;;  %s4607_s16 = smov 8  }
   0xd   :  { %23 = dma.hbm_to_vmem [thread:$0]  %s5883_s0, 256, %s18_s13, [#allocation5], %s4606_s15, %s4606_s15, %s4607_s16  }
   0xe   :  { %4599 = dma.done.wait [#allocation5], 256  }
   0xf   :  { %4600 = vsyncadd [#allocation5], 4294967040  ;;  %v4608_v0 = vmov 0.0   ;;  %v48_v1 = vld [vmem:[#allocation4] sm:$0xff]  ;;  %v49_v2 = vld [vmem:[#allocation4 + $0x8] sm:$0xff]  ;;  %vm551_vm0 = vcmask 1040384   ;;  %v339_v46 = vlaneseq }
  0x10   :  { %31 = vst [vmem:[#allocation2] sm:$0x1] %v4608_v0  ;;  %76 = vxpose.xlu0.b32.start [1/2] (short) %v48_v1, 128  ;;  %v51_v3 = vadd.f32 %v49_v2, %v48_v1  ;;  %3659 = vmatprep.subr.mxu0 %v49_v2  ;;  %vm108_vm1 = vcmask 130048   ;;  %vm502_vm2 = vcmask 7168   ;;  %s4610_s20 = smov [#allocation7]  }
  0x11   :  { %3660 = vmatpush3.msra.mxu0 %v49_v2  ;;  %v4672_v47 = vshrl.u32 %v339_v46, 7  ;;  %v4677_v50 = vand.u32 127, %v339_v46  ;;  %s3055_s21 = sshll.u32 %s4610_s20, 4  ;;  %s3056_s21 = int_to_ptr.vmem [resolvable:$true] %s3055_s21 }
  0x12   :  { %v52_v4 = vrot.slane %v51_v3, 4  ;;  %3661 = vmatprep.subr.mxu0 %v48_v1  ;;  %s4539_s22 = scalar_lea.vmem %s3056_s21, 16  ;;  %s4543_s23 = scalar_lea.vmem %s3056_s21, 32 }
  0x13   :  { %3662 = vmatpush3.msra.mxu0 %v48_v1  ;;  %v4675_v49 = vadd.s32 8, %v4672_v47  ;;  %v4680_v51 = vadd.s32 16, %v4672_v47  ;;  %vm5899_vm4 = vcmp.eq.s32.totalorder %v4672_v47, %v4677_v50  ;;  %v4687_v55 = vadd.s32 24, %v4672_v47  ;;  %p4540_p5 = scmp.ne.s32.totalorder %s3056_s21, %s4539_s22  ;;  %p4544_p6 = scmp.lt.s32.totalorder %s3056_s21, %s3056_s21 }
  0x14   :  { %77 = vxpose.xlu0.b32.end [2/2] (short) %v49_v2, 128  ;;  %v53_v5 = vadd.f32 %v52_v4, %v51_v3  ;;  %v4701_v57 = vsel %vm5899_vm4, 1.0, %v4608_v0  ;;  %v4704_v58 = vadd.s32 32, %v4672_v47  ;;  %v4717_v3 = vadd.s32 40, %v4672_v47  ;;  %p4545_p7 = scmp.lt.s32.totalorder %s4543_s23, %s4539_s22 }
  0x15   :  { %vm5900_vm3 = vcmp.eq.s32.totalorder %v4675_v49, %v4677_v50  ;;  %vm360_vm5 = vcmp.eq.s32.totalorder %v4680_v51, %v4677_v50  ;;  %vm361_vm6 = vcmp.eq.s32.totalorder %v4687_v55, %v4677_v50  ;;  %v406_v2 = vmul.f32 1e-05, %v4701_v57 }
  0x16   :  { %v54_v6 = vrot.slane %v53_v5, 2  ;;  %v4693_v56 = vsel %vm5900_vm3, 1.0, %v4608_v0  ;;  %v4713_v62 = vsel %vm360_vm5, 1.0, %v4608_v0  ;;  %vm362_vm7 = vcmp.eq.s32.totalorder %v4704_v58, %v4677_v50  ;;  %p4546_p8 = por %p4545_p7, %p4544_p6 }
  0x17   :  { %v50_v9 = vld [vmem:[#allocation2] sm:$0x1]  ;;  %v407_v59 = vmul.f32 1e-05, %v4693_v56  ;;  %vm363_vm8 = vcmp.eq.s32.totalorder %v4717_v3, %v4677_v50  ;;  %v5183_v51 = vmul.f32 3.0, %v4693_v56  ;;  %v5186_v55 = vmul.f32 3.0, %v4701_v57 }
  0x18   :  { %v55_v7 = vadd.f32 %v54_v6, %v53_v5  ;;  %p4547_p9 = pnand %p4546_p8, %p4540_p5 }
  0x1a   :  { %v56_v8 = vrot.slane %v55_v7, 1 }
  0x1c   :  { %v57_v10 = vadd.f32 %v56_v8, %v55_v7  ;;  %v4723_v7 = vsel %vm361_vm6, 1.0, %v4608_v0  ;;  %v408_v8 = vmul.f32 1e-05, %v4713_v62 }
  0x1e   :  { %v58_v11 = vadd.f32 %v57_v10, %v50_v9  ;;  %v4729_v9 = vadd.s32 48, %v4672_v47 }
  0x20   :  { %59 = vst [vmem:[#allocation2] sm:$0x1] %v58_v11  ;;  %vm364_vm9 = vcmp.eq.s32.totalorder %v4729_v9, %v4677_v50 }
  0x27   :  { %v337_v12 = vld [vmem:[#allocation2] sm:$0x1] }
  0x28   :  { %v338_v13 = vmul.f32 0.125, %v337_v12  ;;  %v409_v12 = vmul.f32 1e-05, %v4723_v7 }
  0x2a   :  { %470 = vxpose.xlu1.b32.start.end [1/1] (short) %v338_v13, 128  ;;  %3016 = vst [vmem:[#allocation7] sm:$0x1] %v338_v13  ;;  %3687 = vmatprep.subr.msk.mxu1 %vm551_vm0, %v338_v13 }
  0x2b   :  { %3688 = vmatpush3.msk.msra.mxu1 %vm551_vm0, %v338_v13 }
  0x8c   :  { %v92_v14 = vpop.trf.xlu0 }
  0x8d   :  { %3663 = vmatprep.mubr.msk.f32.mxu0 %vm108_vm1, %v92_v14 }
  0x90   :  { %v93_v15 = vpop.trf.xlu0 }
  0x91   :  { %3664 = vmatmul.mubr.msk.f32.vlgmr.msra.gmra.mxu0 %vm108_vm1, %v93_v15  ;;  %v4738_v15 = vsel %vm362_vm7, 1.0, %v4608_v0 }
  0x94   :  { %v94_v16 = vpop.trf.xlu0 }
  0x95   :  { %3666 = vmatprep.mubr.msk.f32.mxu0 %vm108_vm1, %v94_v16 }
  0x98   :  { %v95_v17 = vpop.trf.xlu0 }
  0x99   :  { %3667 = vmatmul.mubr.msk.f32.gmra.mxu0 %vm108_vm1, %v95_v17 }
  0x9c   :  { %v96_v18 = vpop.trf.xlu0 }
  0x9d   :  { %3669 = vmatprep.mubr.msk.f32.mxu0 %vm108_vm1, %v96_v18 }
  0xa0   :  { %v97_v19 = vpop.trf.xlu0 }
  0xa1   :  { %3670 = vmatmul.mubr.msk.f32.gmra.mxu0 %vm108_vm1, %v97_v19  ;;  %v4743_v19 = vadd.s32 56, %v4672_v47 }
  0xa3   :  { %vm365_vm10 = vcmp.eq.s32.totalorder %v4743_v19, %v4677_v50  ;;  %v5193_v19 = vmul.f32 3.0, %v4713_v62 }
  0xa4   :  { %v98_v20 = vpop.trf.xlu0 }
  0xa5   :  { %3672 = vmatprep.mubr.msk.f32.mxu0 %vm108_vm1, %v98_v20  ;;  %v4749_v20 = vsel %vm363_vm8, 1.0, %v4608_v0 }
  0xa6   :  { %v486_v21 = vpop.trf.xlu1  ;;  %v5199_v56 = vmul.f32 3.0, %v4749_v20 }
  0xa7   :  { %3689 = vmatprep.mubr.msk.f32.mxu1 %vm502_vm2, %v486_v21 }
  0xa8   :  { %v99_v22 = vpop.trf.xlu0 }
  0xa9   :  { %3673 = vmatmul.mubr.msk.f32.gmra.mxu0 %vm108_vm1, %v99_v22 }
  0xaa   :  { %v487_v23 = vpop.trf.xlu1 }
  0xab   :  { %3690 = vmatmul.mubr.msk.f32.vlgmr.msra.gmra.mxu1 %vm502_vm2, %v487_v23 }
  0xac   :  { %v100_v24 = vpop.trf.xlu0 }
  0xad   :  { %3675 = vmatprep.mubr.msk.f32.mxu0 %vm108_vm1, %v100_v24 }
  0xae   :  { %v488_v25 = vpop.trf.xlu1 }
  0xaf   :  { %3692 = vmatprep.mubr.msk.f32.mxu1 %vm502_vm2, %v488_v25 }
  0xb0   :  { %v101_v26 = vpop.trf.xlu0 }
  0xb1   :  { %3676 = vmatmul.mubr.msk.f32.gmra.mxu0 %vm108_vm1, %v101_v26  ;;  %v410_v26 = vmul.f32 1e-05, %v4738_v15 }
  0xb2   :  { %v489_v27 = vpop.trf.xlu1 }
  0xb3   :  { %3693 = vmatmul.mubr.msk.f32.gmra.mxu1 %vm502_vm2, %v489_v27  ;;  %v4759_v27 = vadd.s32 64, %v4672_v47 }
  0xb4   :  { %v102_v28 = vpop.trf.xlu0 }
  0xb5   :  { %3678 = vmatprep.mubr.msk.f32.mxu0 %vm108_vm1, %v102_v28  ;;  %vm5897_vm11 = vcmp.eq.s32.totalorder %v4759_v27, %v4677_v50 }
  0xb6   :  { %v490_v29 = vpop.trf.xlu1 }
  0xb7   :  { %3695 = vmatprep.mubr.msk.f32.mxu1 %vm502_vm2, %v490_v29 }
  0xb8   :  { %v103_v30 = vpop.trf.xlu0 }
  0xb9   :  { %3679 = vmatmul.mubr.msk.f32.gmra.mxu0 %vm108_vm1, %v103_v30  ;;  %v4769_v30 = vsel %vm364_vm9, 1.0, %v4608_v0 }
  0xba   :  { %v491_v31 = vpop.trf.xlu1  ;;  %5902 = vst [vmem:[#allocation14_spill] sm:$0xff] %v4769_v30 }
  0xbb   :  { %3696 = vmatmul.mubr.msk.f32.gmra.mxu1 %vm502_vm2, %v491_v31  ;;  %v411_v31 = vmul.f32 1e-05, %v4749_v20 }
  0xbc   :  { %v104_v32 = vpop.trf.xlu0 }
  0xbd   :  { %3681 = vmatprep.mubr.msk.f32.mxu0 %vm108_vm1, %v104_v32 }
  0xbe   :  { %v492_v33 = vpop.trf.xlu1 }
  0xbf   :  { %3698 = vmatprep.mubr.msk.f32.mxu1 %vm502_vm2, %v492_v33 }
  0xc0   :  { %v105_v34 = vpop.trf.xlu0 }
  0xc1   :  { %3682 = vmatmul.mubr.msk.f32.gmra.mxu0 %vm108_vm1, %v105_v34  ;;  %v4773_v34 = vadd.s32 72, %v4672_v47 }
  0xc2   :  { %v493_v35 = vpop.trf.xlu1 }
  0xc3   :  { %3699 = vmatmul.mubr.msk.f32.gmra.mxu1 %vm502_vm2, %v493_v35  ;;  %vm5898_vm12 = vcmp.eq.s32.totalorder %v4773_v34, %v4677_v50 }
  0xc4   :  { %v106_v36 = vpop.trf.xlu0 }
  0xc5   :  { %3684 = vmatprep.mubr.msk.f32.mxu0 %vm108_vm1, %v106_v36 }
  0xc6   :  { %v494_v37 = vpop.trf.xlu1 }
  0xc7   :  { %3701 = vmatprep.mubr.msk.f32.mxu1 %vm502_vm2, %v494_v37 }
  0xc8   :  { %v107_v38 = vpop.trf.xlu0 }
  0xc9   :  { %3685 = vmatmul.mubr.msk.f32.gmra.mxu0 %vm108_vm1, %v107_v38 }
  0xca   :  { %v495_v39 = vpop.trf.xlu1 }
  0xcb   :  { %3702 = vmatmul.mubr.msk.f32.gmra.mxu1 %vm502_vm2, %v495_v39  ;;  %v4783_v39 = vsel %vm365_vm10, 1.0, %v4608_v0 }
  0xcc   :  { %5903 = vst [vmem:[#allocation15_spill] sm:$0xff] %v4783_v39 }
  0xce   :  { %v496_v40 = vpop.trf.xlu1 }
  0xcf   :  { %3704 = vmatprep.mubr.msk.f32.mxu1 %vm502_vm2, %v496_v40 }
  0xd2   :  { %v497_v41 = vpop.trf.xlu1 }
  0xd3   :  { %3705 = vmatmul.mubr.msk.f32.gmra.mxu1 %vm502_vm2, %v497_v41 }
  0xd6   :  { %v498_v42 = vpop.trf.xlu1 }
  0xd7   :  { %3707 = vmatprep.mubr.msk.f32.mxu1 %vm502_vm2, %v498_v42  ;;  %v412_v42 = vmul.f32 1e-05, %v4769_v30 }
  0xda   :  { %v499_v43 = vpop.trf.xlu1 }
  0xdb   :  { %3708 = vmatmul.mubr.msk.f32.gmra.mxu1 %vm502_vm2, %v499_v43 }
  0xde   :  { %v500_v44 = vpop.trf.xlu1 }
  0xdf   :  { %3710 = vmatprep.mubr.msk.f32.mxu1 %vm502_vm2, %v500_v44 }
  0xe2   :  { %v501_v45 = vpop.trf.xlu1 }
  0xe3   :  { %3711 = vmatmul.mubr.msk.f32.gmra.mxu1 %vm502_vm2, %v501_v45 }
 0x151   :  { %v3665_v48 = vpop.f32.mrf.mxu0 }
 0x152   :  { %v439_v63 = vmul.f32 0.125, %v3665_v48  ;;  %v4793_v48 = vadd.s32 80, %v4672_v47 }
 0x153   :  { %v223_v52 = vpop.f32.mrf.mxu0 }
 0x154   :  { %v438_v1 = vmul.f32 0.125, %v223_v52  ;;  %v455_v10 = vadd.f32 %v439_v63, %v407_v59  ;;  %v413_v59 = vmul.f32 1e-05, %v4783_v39  ;;  %v4805_v63 = vadd.s32 88, %v4672_v47 }
 0x155   :  { %vm368_vm13 = vcmp.eq.s32.totalorder %v4793_v48, %v4677_v50  ;;  %v5923_v48 = vld [vmem:[#allocation15_spill] sm:$0xff] }
 0x156   :  { %v454_v11 = vadd.f32 %v438_v1, %v406_v2  ;;  %vm369_vm14 = vcmp.eq.s32.totalorder %v4805_v63, %v4677_v50  ;;  %v5213_v20 = vmul.f32 3.0, %v5923_v48 }
 0x159   :  { %v3668_v54 = vpop.f32.mrf.mxu0 }
 0x15a   :  { %v441_v16 = vmul.f32 0.125, %v3668_v54  ;;  %v4801_v54 = vsel %vm5897_vm11, 1.0, %v4608_v0 }
 0x15b   :  { %v233_v61 = vpop.f32.mrf.mxu0  ;;  %5904 = vst [vmem:[#allocation16_spill] sm:$0xff] %v4801_v54 }
 0x15c   :  { %v440_v6 = vmul.f32 0.125, %v233_v61  ;;  %v457_v29 = vadd.f32 %v441_v16, %v409_v12 }
 0x15e   :  { %v456_v18 = vadd.f32 %v440_v6, %v408_v8  ;;  %v4815_v6 = vsel %vm5898_vm12, 1.0, %v4608_v0 }
 0x15f   :  { %5905 = vst [vmem:[#allocation17_spill] sm:$0xff] %v4815_v6 }
 0x161   :  { %v3671_v5 = vpop.f32.mrf.mxu0 }
 0x162   :  { %v443_v36 = vmul.f32 0.125, %v3671_v5 }
 0x163   :  { %v243_v14 = vpop.f32.mrf.mxu0 }
 0x164   :  { %v442_v25 = vmul.f32 0.125, %v243_v14 }
 0x166   :  { %v458_v38 = vadd.f32 %v442_v25, %v410_v26  ;;  %v4830_v25 = vsel %vm368_vm13, 1.0, %v4608_v0  ;;  %v415_v26 = vmul.f32 1e-05, %v4815_v6 }
 0x167   :  { %5906 = vst [vmem:[#allocation18_spill] sm:$0xff] %v4830_v25 }
 0x169   :  { %v3674_v22 = vpop.f32.mrf.mxu0 }
 0x16a   :  { %v445_v2 = vmul.f32 0.125, %v3674_v22 }
 0x16b   :  { %v3691_v53 = vpop.f32.mrf.mxu1  ;;  %v253_v33 = vpop.f32.mrf.mxu0 }
 0x16c   :  { %v4753_v23 = vsub.f32 %v455_v10, %v3691_v53  ;;  %v444_v46 = vmul.f32 0.125, %v253_v33  ;;  %v459_v53 = vadd.f32 %v443_v36, %v411_v31  ;;  %v414_v10 = vmul.f32 1e-05, %v4801_v54 }
 0x16d   :  { %v621_v60 = vpop.f32.mrf.mxu1  ;;  %v461_v22 = vadd.f32 %v445_v2, %v413_v59  ;;  %v4844_v36 = vsel %vm369_vm14, 1.0, %v4608_v0 }
 0x16e   :  { %v4740_v17 = vsub.f32 %v454_v11, %v621_v60  ;;  %v717_v35 = vmul.f32 %v4753_v23, %v4753_v23  ;;  %v460_v5 = vadd.f32 %v444_v46, %v412_v42  ;;  %5907 = vst [vmem:[#allocation19_spill] sm:$0xff] %v4844_v36 }
 0x170   :  { %v716_v28 = vmul.f32 %v4740_v17, %v4740_v17 }
 0x171   :  { %v3677_v41 = vpop.f32.mrf.mxu0 }
 0x172   :  { %v732_v43 = vadd.f32 %v717_v35, %v716_v28 }
 0x173   :  { %v3694_v4 = vpop.f32.mrf.mxu1  ;;  %v263_v61 = vpop.f32.mrf.mxu0 }
 0x174   :  { %v4788_v44 = vsub.f32 %v457_v29, %v3694_v4  ;;  %v446_v14 = vmul.f32 0.125, %v263_v61  ;;  %v4834_v29 = vadd.s32 96, %v4672_v47 }
 0x175   :  { %v631_v13 = vpop.f32.mrf.mxu1 }
 0x176   :  { %v4755_v24 = vsub.f32 %v456_v18, %v631_v13  ;;  %v719_v1 = vmul.f32 %v4788_v44, %v4788_v44  ;;  %v462_v35 = vadd.f32 %v446_v14, %v414_v10  ;;  %vm370_vm15 = vcmp.eq.s32.totalorder %v4834_v29, %v4677_v50 }
 0x177   :  { %v4870_v14 = vsel %vm370_vm15, 1.0, %v4608_v0 }
 0x178   :  { %v718_v37 = vmul.f32 %v4755_v24, %v4755_v24  ;;  %5908 = vst [vmem:[#allocation20_spill] sm:$0xff] %v4870_v14 }
 0x179   :  { %v3680_v8 = vpop.f32.mrf.mxu0 }
 0x17a   :  { %v733_v52 = vadd.f32 %v732_v43, %v718_v37  ;;  %v416_v37 = vmul.f32 1e-05, %v4830_v25  ;;  %v449_v2 = vmul.f32 0.125, %v3680_v8 }
 0x17b   :  { %v3697_v21 = vpop.f32.mrf.mxu1  ;;  %v273_v28 = vpop.f32.mrf.mxu0 }
 0x17c   :  { %v4820_v11 = vsub.f32 %v459_v53, %v3697_v21  ;;  %v734_v12 = vadd.f32 %v733_v52, %v719_v1  ;;  %v4860_v1 = vadd.s32 120, %v4672_v47 }
 0x17d   :  { %v641_v32 = vpop.f32.mrf.mxu1 }
 0x17e   :  { %v4790_v45 = vsub.f32 %v458_v38, %v641_v32  ;;  %v721_v31 = vmul.f32 %v4820_v11, %v4820_v11  ;;  %v447_v32 = vmul.f32 0.125, %v3677_v41  ;;  %v4848_v38 = vadd.s32 104, %v4672_v47 }
 0x17f   :  { %v448_v41 = vmul.f32 0.125, %v273_v28  ;;  %vm5901_vm1 = vcmp.eq.s32.totalorder %v4860_v1, %v4677_v50 }
 0x180   :  { %v720_v4 = vmul.f32 %v4790_v45, %v4790_v45  ;;  %v463_v59 = vadd.f32 %v447_v32, %v415_v26  ;;  %vm371_vm0 = vcmp.eq.s32.totalorder %v4848_v38, %v4677_v50 }
 0x181   :  { %v3683_v52 = vpop.f32.mrf.mxu0  ;;  %v4883_v8 = vsel %vm371_vm0, 1.0, %v4608_v0 }
 0x182   :  { %v735_v18 = vadd.f32 %v734_v12, %v720_v4  ;;  %5909 = vst [vmem:[#allocation21_spill] sm:$0xff] %v4883_v8 }
 0x183   :  { %v3700_v40 = vpop.f32.mrf.mxu1  ;;  %v283_v12 = vpop.f32.mrf.mxu0 }
 0x184   :  { %v4850_v42 = vsub.f32 %v461_v22, %v3700_v40  ;;  %v736_v43 = vadd.f32 %v735_v18, %v721_v31  ;;  %v4873_v18 = vadd.s32 112, %v4672_v47  ;;  %v450_v32 = vmul.f32 0.125, %v283_v12 }
 0x185   :  { %v651_v60 = vpop.f32.mrf.mxu1 }
 0x186   :  { %v4822_v13 = vsub.f32 %v460_v5, %v651_v60  ;;  %v417_v60 = vmul.f32 1e-05, %v4844_v36  ;;  %v723_v40 = vmul.f32 %v4850_v42, %v4850_v42  ;;  %v464_v5 = vadd.f32 %v448_v41, %v416_v37 }
 0x187   :  { %vm372_vm2 = vcmp.eq.s32.totalorder %v4873_v18, %v4677_v50 }
 0x188   :  { %v722_v33 = vmul.f32 %v4822_v13, %v4822_v13  ;;  %v465_v31 = vadd.f32 %v449_v2, %v417_v60 }
 0x18a   :  { %v737_v53 = vadd.f32 %v736_v43, %v722_v33  ;;  %v418_v33 = vmul.f32 1e-05, %v4870_v14  ;;  %v451_v43 = vmul.f32 0.125, %v3683_v52  ;;  %v4908_v52 = vsel %vm372_vm2, 1.0, %v4608_v0 }
 0x18b   :  { %v3703_v16 = vpop.f32.mrf.mxu1  ;;  %5911 = vst [vmem:[#allocation23_spill] sm:$0xff] %v4908_v52 }
 0x18c   :  { %v4875_v22 = vsub.f32 %v463_v59, %v3703_v16  ;;  %v738_v26 = vadd.f32 %v737_v53, %v723_v40  ;;  %v419_v16 = vmul.f32 1e-05, %v4883_v8  ;;  %v4899_v53 = vsel %vm5901_vm1, 1.0, %v4608_v0 }
 0x18d   :  { %v661_v21 = vpop.f32.mrf.mxu1  ;;  %5910 = vst [vmem:[#allocation22_spill] sm:$0xff] %v4899_v53  ;;  %v466_v2 = vadd.f32 %v450_v32, %v418_v33  ;;  %v420_v32 = vmul.f32 1e-05, %v4908_v52 }
 0x18e   :  { %v4852_v46 = vsub.f32 %v462_v35, %v661_v21  ;;  %v3686_v35 = vpop.f32.mrf.mxu0  ;;  %v725_v37 = vmul.f32 %v4875_v22, %v4875_v22 }
 0x18f   :  { %v453_v14 = vmul.f32 0.125, %v3686_v35 }
 0x190   :  { %v724_v4 = vmul.f32 %v4852_v46, %v4852_v46 }
 0x192   :  { %v739_v28 = vadd.f32 %v738_v26, %v724_v4  ;;  %v467_v26 = vadd.f32 %v451_v43, %v419_v16 }
 0x193   :  { %v3706_v61 = vpop.f32.mrf.mxu1 }
 0x194   :  { %v4901_v60 = vsub.f32 %v465_v31, %v3706_v61  ;;  %v740_v40 = vadd.f32 %v739_v28, %v725_v37 }
 0x195   :  { %v671_v10 = vpop.f32.mrf.mxu1 }
 0x196   :  { %v4877_v21 = vsub.f32 %v464_v5, %v671_v10  ;;  %v293_v5 = vpop.f32.mrf.mxu0  ;;  %v421_v10 = vmul.f32 1e-05, %v4899_v53  ;;  %v727_v61 = vmul.f32 %v4901_v60, %v4901_v60 }
 0x197   :  { %v452_v31 = vmul.f32 0.125, %v293_v5 }
 0x198   :  { %v726_v41 = vmul.f32 %v4877_v21, %v4877_v21  ;;  %v469_v53 = vadd.f32 %v453_v14, %v421_v10  ;;  %v4609_v10 = vmov 1.0  }
 0x199   :  { %v468_v36 = vadd.f32 %v452_v31, %v420_v32  ;;  %3745 = vmatprep.mubr.msk.f32.mxu1 %vm5899_vm4, %v4609_v10 }
 0x19a   :  { %v741_v12 = vadd.f32 %v740_v40, %v726_v41 }
 0x19b   :  { %v3709_v59 = vpop.f32.mrf.mxu1 }
 0x19c   :  { %v713_v33 = vsub.f32 %v467_v26, %v3709_v59  ;;  %v742_v37 = vadd.f32 %v741_v12, %v727_v61 }
 0x19d   :  { %v681_v4 = vpop.f32.mrf.mxu1 }
 0x19e   :  { %v4910_v8 = vsub.f32 %v466_v2, %v681_v4  ;;  %v729_v16 = vmul.f32 %v713_v33, %v713_v33 }
 0x1a0   :  { %v728_v28 = vmul.f32 %v4910_v8, %v4910_v8 }
 0x1a2   :  { %v743_v0 = vadd.f32 %v742_v37, %v728_v28 }
 0x1a3   :  { %v3712_v25 = vpop.f32.mrf.mxu1 }
 0x1a4   :  { %v715_v35 = vsub.f32 %v469_v53, %v3712_v25  ;;  %v744_v2 = vadd.f32 %v743_v0, %v729_v16 }
 0x1a5   :  { %v691_v41 = vpop.f32.mrf.mxu1 }
 0x1a6   :  { %v714_v43 = vsub.f32 %v468_v36, %v691_v41  ;;  %v731_v4 = vmul.f32 %v715_v35, %v715_v35 }
 0x1a8   :  { %v730_v40 = vmul.f32 %v714_v43, %v714_v43 }
 0x1aa   :  { %v745_v54 = vadd.f32 %v744_v2, %v730_v40  ;;  %v5925_v2 = vld [vmem:[#allocation17_spill] sm:$0xff] }
 0x1ac   :  { %v746_v6 = vadd.f32 %v745_v54, %v731_v4  ;;  %v5227_v4 = vmul.f32 3.0, %v5925_v2 }
 0x1ae   :  { %747 = vadd.xlane.f32.xlu1 %v746_v6 }
 0x237   :  { %v748_v30 = vpop.xlane.xlu1 %747 }
 0x238   :  { %v749_v5 = vrot.slane %v748_v30, 4 }
 0x23a   :  { %v750_v39 = vadd.f32 %v749_v5, %v748_v30 }
 0x23c   :  { %v751_v52 = vrot.slane %v750_v39, 2 }
 0x23e   :  { %v752_v59 = vadd.f32 %v751_v52, %v750_v39 }
 0x240   :  { %v753_v12 = vrot.slane %v752_v59, 1 }
 0x242   :  { %v754_v14 = vadd.f32 %v753_v12, %v752_v59 }
 0x244   :  { %4497 = vpush %v754_v14  ;;  %v5926_v14 = vld [vmem:[#allocation16_spill] sm:$0xff] }
 0x275   :  { %s4498_s0 = spop %4497 }
 0x276   :  { %v756_v25 = vstv %s4498_s0 }
 0x277   :  { %4511 = vrsqrt.f32 %v756_v25  ;;  %vm759_vm11 = vcmp.eq.f32.partialorder %v756_v25, inf  ;;  %v762_v6 = vand.u32 2147483648, %v756_v25  ;;  %vm761_vm12 = vcmp.eq.f32.partialorder %v756_v25, 0.0 }
 0x284   :  { %v4512_v36 = vpop.eup %4511 }
 0x285   :  { %v758_v54 = vmul.f32 %v4512_v36, %v756_v25 }
 0x287   :  { %v760_v53 = vsel %vm759_vm11, %v756_v25, %v758_v54 }
 0x288   :  { %v763_v30 = vsel %vm761_vm12, %v762_v6, %v760_v53  ;;  %v5927_v6 = vld [vmem:[#allocation19_spill] sm:$0xff] }
 0x289   :  { %4499 = vpush %v763_v30  ;;  %v5239_v53 = vmul.f32 3.0, %v5927_v6 }
 0x2ba   :  { %s4500_s19 = spop %4499 }
 0x2bb   :  { %v765_v39 = vstv %s4500_s19 }
 0x2bc   :  { %4513 = vrcp.f32 %v765_v39  ;;  %vm2992_vm11 = vcmp.eq.f32.partialorder %v765_v39, inf  ;;  %v2995_v37 = vand.u32 2147483648, %v765_v39  ;;  %vm2994_vm12 = vcmp.eq.f32.partialorder %v765_v39, 0.0 }
 0x2bd   :  { %4515 = vrsqrt.f32 %v765_v39 }
 0x2c9   :  { %v4514_v52 = vpop.eup %4513 }
 0x2ca   :  { %v4516_v26 = vpop.eup %4515  ;;  %v4921_v61 = vmul.f32 %v4514_v52, %v715_v35  ;;  %v767_v28 = vmul.f32 %v4514_v52, %v4740_v17  ;;  %v4925_v32 = vmul.f32 %v4514_v52, %v714_v43  ;;  %v4929_v16 = vmul.f32 %v4514_v52, %v713_v33 }
 0x2cb   :  { %v2991_v31 = vmul.f32 %v4516_v26, %v765_v39  ;;  %v4934_v17 = vmul.f32 %v4514_v52, %v4910_v8  ;;  %v4939_v35 = vmul.f32 %v4514_v52, %v4901_v60  ;;  %v4944_v33 = vmul.f32 %v4514_v52, %v4877_v21  ;;  %v5928_v26 = vld [vmem:[#allocation18_spill] sm:$0xff] }
 0x2cc   :  { %3713 = vmatprep.subr.mxu1 %v4921_v61  ;;  %3801 = vmatprep.mubr.f32.mxu0 %v767_v28  ;;  %v4949_v8 = vmul.f32 %v4514_v52, %v4875_v22  ;;  %v4954_v60 = vmul.f32 %v4514_v52, %v4852_v46  ;;  %v4959_v21 = vmul.f32 %v4514_v52, %v4850_v42 }
 0x2cd   :  { %3714 = vmatpush3.msra.mxu1 %v4921_v61  ;;  %v2993_v0 = vsel %vm2992_vm11, %v765_v39, %v2991_v31  ;;  %v4964_v22 = vmul.f32 %v4514_v52, %v4822_v13  ;;  %v4969_v46 = vmul.f32 %v4514_v52, %v4820_v11  ;;  %v4974_v42 = vmul.f32 %v4514_v52, %v4790_v45 }
 0x2ce   :  { %3715 = vmatprep.subr.mxu1 %v4925_v32  ;;  %v2996_v41 = vsel %vm2994_vm12, %v2995_v37, %v2993_v0  ;;  %v4979_v13 = vmul.f32 %v4514_v52, %v4788_v44  ;;  %v4984_v11 = vmul.f32 %v4514_v52, %v4755_v24  ;;  %v4989_v45 = vmul.f32 %v4514_v52, %v4753_v23 }
 0x2cf   :  { %4501 = vpush %v2996_v41  ;;  %3716 = vmatpush3.msra.mxu1 %v4925_v32  ;;  %vm5912_vm11 = vcmp.eq.s32.totalorder %v4773_v34, %v4677_v50  ;;  %vm5913_vm12 = vcmp.eq.s32.totalorder %v4759_v27, %v4677_v50  ;;  %v5205_v27 = vmul.f32 3.0, %v4738_v15  ;;  %v5929_v41 = vld [vmem:[#allocation21_spill] sm:$0xff] }
 0x2d0   :  { %3717 = vmatprep.subr.mxu1 %v4929_v16  ;;  %vm5914_vm4 = vmmov %vm5912_vm11 }
 0x2d1   :  { %3718 = vmatpush3.msra.mxu1 %v4929_v16 }
 0x2d2   :  { %3719 = vmatprep.subr.mxu1 %v4934_v17 }
 0x2d3   :  { %3720 = vmatpush3.msra.mxu1 %v4934_v17 }
 0x2d4   :  { %3721 = vmatprep.subr.mxu1 %v4939_v35 }
 0x2d5   :  { %3722 = vmatpush3.msra.mxu1 %v4939_v35 }
 0x2d6   :  { %3723 = vmatprep.subr.mxu1 %v4944_v33 }
 0x2d7   :  { %3724 = vmatpush3.msra.mxu1 %v4944_v33 }
 0x2d8   :  { %3725 = vmatprep.subr.mxu1 %v4949_v8 }
 0x2d9   :  { %3726 = vmatpush3.msra.mxu1 %v4949_v8 }
 0x2da   :  { %3727 = vmatprep.subr.mxu1 %v4954_v60 }
 0x2db   :  { %3728 = vmatpush3.msra.mxu1 %v4954_v60 }
 0x2dc   :  { %3729 = vmatprep.subr.mxu1 %v4959_v21 }
 0x2dd   :  { %3730 = vmatpush3.msra.mxu1 %v4959_v21 }
 0x2de   :  { %3731 = vmatprep.subr.mxu1 %v4964_v22 }
 0x2df   :  { %3732 = vmatpush3.msra.mxu1 %v4964_v22 }
 0x2e0   :  { %3733 = vmatprep.subr.mxu1 %v4969_v46 }
 0x2e1   :  { %3734 = vmatpush3.msra.mxu1 %v4969_v46 }
 0x2e2   :  { %3735 = vmatprep.subr.mxu1 %v4974_v42 }
 0x2e3   :  { %3736 = vmatpush3.msra.mxu1 %v4974_v42 }
 0x2e4   :  { %3737 = vmatprep.subr.mxu1 %v4979_v13 }
 0x2e5   :  { %3738 = vmatpush3.msra.mxu1 %v4979_v13 }
 0x2e6   :  { %3739 = vmatprep.subr.mxu1 %v4984_v11 }
 0x2e7   :  { %3740 = vmatpush3.msra.mxu1 %v4984_v11 }
 0x2e8   :  { %3741 = vmatprep.subr.mxu1 %v4989_v45 }
 0x2e9   :  { %3742 = vmatpush3.msra.mxu1 %v4989_v45 }
 0x2ea   :  { %3743 = vmatprep.subr.mxu1 %v767_v28 }
 0x2eb   :  { %3744 = vmatpush3.msra.mxu1 %v767_v28  ;;  %v5243_v28 = vmul.f32 3.0, %v5928_v26 }
 0x2ec   :  { %3746 = vmatmul.mubr.msk.f32.vlgmr.msra.gmra.mxu1 %vm5900_vm3, %v4609_v10  ;;  %3825 = vmatprep.subr.msk.mxu1 %vm5901_vm1, %v4609_v10  ;;  %vm5915_vm3 = vmmov %vm5913_vm12 }
 0x2ed   :  { %3748 = vmatprep.mubr.msk.f32.mxu1 %vm360_vm5, %v4609_v10  ;;  %3826 = vmatpush3.msk.msra.mxu1 %vm5901_vm1, %v4609_v10  ;;  %vm5916_vm1 = vmmov %vm5915_vm3 }
 0x2ee   :  { %3827 = vmatprep.subr.msk.mxu1 %vm372_vm2, %v4609_v10 }
 0x2ef   :  { %3828 = vmatpush3.msk.msra.mxu1 %vm372_vm2, %v4609_v10 }
 0x2f0   :  { %3749 = vmatmul.mubr.msk.f32.gmra.mxu1 %vm361_vm6, %v4609_v10  ;;  %3829 = vmatprep.subr.msk.mxu1 %vm371_vm0, %v4609_v10 }
 0x2f1   :  { %3751 = vmatprep.mubr.msk.f32.mxu1 %vm362_vm7, %v4609_v10  ;;  %3830 = vmatpush3.msk.msra.mxu1 %vm371_vm0, %v4609_v10 }
 0x2f2   :  { %3831 = vmatprep.subr.msk.mxu1 %vm370_vm15, %v4609_v10 }
 0x2f3   :  { %3832 = vmatpush3.msk.msra.mxu1 %vm370_vm15, %v4609_v10 }
 0x2f4   :  { %3752 = vmatmul.mubr.msk.f32.gmra.mxu1 %vm363_vm8, %v4609_v10  ;;  %3833 = vmatprep.subr.msk.mxu1 %vm369_vm14, %v4609_v10 }
 0x2f5   :  { %3754 = vmatprep.mubr.msk.f32.mxu1 %vm364_vm9, %v4609_v10  ;;  %3834 = vmatpush3.msk.msra.mxu1 %vm369_vm14, %v4609_v10 }
 0x2f6   :  { %3835 = vmatprep.subr.msk.mxu1 %vm368_vm13, %v4609_v10 }
 0x2f7   :  { %3836 = vmatpush3.msk.msra.mxu1 %vm368_vm13, %v4609_v10 }
 0x2f8   :  { %3755 = vmatmul.mubr.msk.f32.gmra.mxu1 %vm365_vm10, %v4609_v10  ;;  %3837 = vmatprep.subr.msk.mxu1 %vm5912_vm11, %v4609_v10  ;;  %vm5917_vm11 = vmmov %vm5914_vm4 }
 0x2f9   :  { %3757 = vmatprep.mubr.msk.f32.mxu1 %vm5913_vm12, %v4609_v10  ;;  %3838 = vmatpush3.msk.msra.mxu1 %vm5914_vm4, %v4609_v10  ;;  %vm5919_vm4 = vcmp.eq.s32.totalorder %v4675_v49, %v4677_v50  ;;  %v5189_v49 = vmul.f32 3.0, %v4723_v7 }
 0x2fa   :  { %3839 = vmatprep.subr.msk.mxu1 %vm5915_vm3, %v4609_v10  ;;  %vm5918_vm3 = vcmp.eq.s32.totalorder %v4860_v1, %v4677_v50  ;;  %v5924_v1 = vld [vmem:[#allocation14_spill] sm:$0xff] }
 0x2fb   :  { %3840 = vmatpush3.msk.msra.mxu1 %vm5916_vm1, %v4609_v10  ;;  %v5219_v15 = vmul.f32 3.0, %v5924_v1 }
 0x2fc   :  { %3758 = vmatmul.mubr.msk.f32.gmra.mxu1 %vm5917_vm11, %v4609_v10  ;;  %3841 = vmatprep.subr.msk.mxu1 %vm365_vm10, %v4609_v10 }
 0x2fd   :  { %3760 = vmatprep.mubr.msk.f32.mxu1 %vm368_vm13, %v4609_v10  ;;  %3842 = vmatpush3.msk.msra.mxu1 %vm365_vm10, %v4609_v10 }
 0x2fe   :  { %3843 = vmatprep.subr.msk.mxu1 %vm364_vm9, %v4609_v10 }
 0x2ff   :  { %3844 = vmatpush3.msk.msra.mxu1 %vm364_vm9, %v4609_v10 }
 0x300   :  { %3761 = vmatmul.mubr.msk.f32.gmra.mxu1 %vm369_vm14, %v4609_v10  ;;  %3845 = vmatprep.subr.msk.mxu1 %vm363_vm8, %v4609_v10 }
 0x301   :  { %3763 = vmatprep.mubr.msk.f32.mxu1 %vm370_vm15, %v4609_v10  ;;  %3846 = vmatpush3.msk.msra.mxu1 %vm363_vm8, %v4609_v10 }
 0x302   :  { %3847 = vmatprep.subr.msk.mxu1 %vm362_vm7, %v4609_v10 }
 0x303   :  { %3848 = vmatpush3.msk.msra.mxu1 %vm362_vm7, %v4609_v10  ;;  %vm5921_vm7 = vcmp.eq.s32.totalorder %v4672_v47, %v4677_v50 }
 0x304   :  { %3764 = vmatmul.mubr.msk.f32.gmra.mxu1 %vm371_vm0, %v4609_v10  ;;  %3849 = vmatprep.subr.msk.mxu1 %vm361_vm6, %v4609_v10 }
 0x305   :  { %3766 = vmatprep.mubr.msk.f32.mxu1 %vm372_vm2, %v4609_v10  ;;  %3850 = vmatpush3.msk.msra.mxu1 %vm361_vm6, %v4609_v10  ;;  %vm5920_vm6 = vmmov %vm5919_vm4 }
 0x306   :  { %3851 = vmatprep.subr.msk.mxu1 %vm360_vm5, %v4609_v10 }
 0x307   :  { %3852 = vmatpush3.msk.msra.mxu1 %vm360_vm5, %v4609_v10  ;;  %vm5922_vm5 = vmmov %vm5921_vm7 }
 0x308   :  { %3767 = vmatmul.mubr.msk.f32.gmra.mxu1 %vm5918_vm3, %v4609_v10  ;;  %3853 = vmatprep.subr.msk.mxu1 %vm5919_vm4, %v4609_v10 }
 0x309   :  { %3854 = vmatpush3.msk.msra.mxu1 %vm5920_vm6, %v4609_v10 }
 0x30a   :  { %3855 = vmatprep.subr.msk.mxu1 %vm5921_vm7, %v4609_v10 }
 0x30b   :  { %3856 = vmatpush3.msk.msra.mxu1 %vm5922_vm5, %v4609_v10  ;;  %v5233_v10 = vmul.f32 3.0, %v5926_v14 }
 0x3ac   :  { %v3747_v58 = vpop.f32.mrf.mxu1 }
 0x3ad   :  { %v945_v3 = vsub.f32 %v5183_v51, %v3747_v58  ;;  %v5247_v58 = vmul.f32 3.0, %v5929_v41 }
 0x3ae   :  { %v865_v9 = vpop.f32.mrf.mxu1 }
 0x3af   :  { %v944_v23 = vsub.f32 %v5186_v55, %v865_v9  ;;  %v5201_v57 = vmul.f32 0.5, %v945_v3 }
 0x3b0   :  { %v3750_v47 = vpop.f32.mrf.mxu1 }
 0x3b1   :  { %v5196_v50 = vmul.f32 0.5, %v944_v23  ;;  %v947_v24 = vsub.f32 %v5189_v49, %v3750_v47  ;;  %v5930_v47 = vld [vmem:[#allocation20_spill] sm:$0xff] }
 0x3b2   :  { %v875_v7 = vpop.f32.mrf.mxu1 }
 0x3b3   :  { %v946_v34 = vsub.f32 %v5193_v19, %v875_v7  ;;  %3857 = vmatprep.mubr.f32.mxu1 %v5196_v50  ;;  %v5215_v63 = vmul.f32 0.5, %v947_v24  ;;  %v5251_v24 = vmul.f32 3.0, %v5930_v47 }
 0x3b4   :  { %v3753_v62 = vpop.f32.mrf.mxu1  ;;  %3858 = vmatmul.mubr.f32.vlgmr.msra.gmra.mxu1 %v5201_v57 }
 0x3b5   :  { %v5210_v44 = vmul.f32 0.5, %v946_v34  ;;  %v949_v29 = vsub.f32 %v5199_v56, %v3753_v62  ;;  %v5931_v62 = vld [vmem:[#allocation22_spill] sm:$0xff] }
 0x3b6   :  { %v885_v38 = vpop.f32.mrf.mxu1  ;;  %v5255_v48 = vmul.f32 3.0, %v5931_v62 }
 0x3b7   :  { %v948_v18 = vsub.f32 %v5205_v27, %v885_v38  ;;  %3860 = vmatprep.mubr.f32.mxu1 %v5210_v44  ;;  %v5229_v5 = vmul.f32 0.5, %v949_v29 }
 0x3b8   :  { %v3756_v43 = vpop.f32.mrf.mxu1  ;;  %3861 = vmatmul.mubr.f32.gmra.mxu1 %v5215_v63 }
 0x3b9   :  { %v5224_v40 = vmul.f32 0.5, %v948_v18  ;;  %v951_v59 = vsub.f32 %v5213_v20, %v3756_v43  ;;  %v5932_v43 = vld [vmem:[#allocation23_spill] sm:$0xff] }
 0x3ba   :  { %v895_v12 = vpop.f32.mrf.mxu1  ;;  %v5259_v2 = vmul.f32 3.0, %v5932_v43 }
 0x3bb   :  { %v950_v25 = vsub.f32 %v5219_v15, %v895_v12  ;;  %3863 = vmatprep.mubr.f32.mxu1 %v5224_v40  ;;  %v967_v30 = vmul.f32 0.5, %v951_v59 }
 0x3bc   :  { %v3759_v36 = vpop.f32.mrf.mxu1  ;;  %3864 = vmatmul.mubr.f32.gmra.mxu1 %v5229_v5 }
 0x3bd   :  { %v966_v54 = vmul.f32 0.5, %v950_v25  ;;  %v953_v39 = vsub.f32 %v5227_v4, %v3759_v36 }
 0x3be   :  { %v905_v52 = vpop.f32.mrf.mxu1 }
 0x3bf   :  { %v952_v31 = vsub.f32 %v5233_v10, %v905_v52  ;;  %3866 = vmatprep.mubr.f32.mxu1 %v966_v54  ;;  %v969_v3 = vmul.f32 0.5, %v953_v39 }
 0x3c0   :  { %v3762_v37 = vpop.f32.mrf.mxu1  ;;  %3867 = vmatmul.mubr.f32.gmra.mxu1 %v967_v30 }
 0x3c1   :  { %v968_v0 = vmul.f32 0.5, %v952_v31  ;;  %v955_v9 = vsub.f32 %v5239_v53, %v3762_v37 }
 0x3c2   :  { %v915_v23 = vpop.f32.mrf.mxu1 }
 0x3c3   :  { %v954_v7 = vsub.f32 %v5243_v28, %v915_v23  ;;  %3869 = vmatprep.mubr.f32.mxu1 %v968_v0  ;;  %v971_v38 = vmul.f32 0.5, %v955_v9 }
 0x3c4   :  { %v3765_v34 = vpop.f32.mrf.mxu1  ;;  %3870 = vmatmul.mubr.f32.gmra.mxu1 %v969_v3 }
 0x3c5   :  { %v970_v29 = vmul.f32 0.5, %v954_v7  ;;  %v957_v1 = vsub.f32 %v5247_v58, %v3765_v34 }
 0x3c6   :  { %v925_v18 = vpop.f32.mrf.mxu1 }
 0x3c7   :  { %v956_v59 = vsub.f32 %v5251_v24, %v925_v18  ;;  %3872 = vmatprep.mubr.f32.mxu1 %v970_v29  ;;  %v973_v36 = vmul.f32 0.5, %v957_v1 }
 0x3c8   :  { %v3768_v12 = vpop.f32.mrf.mxu1  ;;  %3873 = vmatmul.mubr.f32.gmra.mxu1 %v971_v38 }
 0x3c9   :  { %v972_v14 = vmul.f32 0.5, %v956_v59  ;;  %v959_v25 = vsub.f32 %v5255_v48, %v3768_v12 }
 0x3ca   :  { %v935_v6 = vpop.f32.mrf.mxu1 }
 0x3cb   :  { %v975_v39 = vmul.f32 0.5, %v959_v25  ;;  %v958_v52 = vsub.f32 %v5259_v2, %v935_v6  ;;  %3875 = vmatprep.mubr.f32.mxu1 %v972_v14 }
 0x3cc   :  { %3876 = vmatmul.mubr.f32.gmra.mxu1 %v973_v36 }
 0x3cd   :  { %v974_v26 = vmul.f32 0.5, %v958_v52  ;;  %3769 = vmatprep.subr.mxu0 %v975_v39 }
 0x3ce   :  { %3770 = vmatpush3.msra.mxu0 %v975_v39 }
 0x3cf   :  { %3771 = vmatprep.subr.mxu0 %v974_v26  ;;  %3878 = vmatprep.mubr.f32.mxu1 %v974_v26 }
 0x3d0   :  { %3772 = vmatpush3.msra.mxu0 %v974_v26  ;;  %3879 = vmatmul.mubr.f32.gmra.mxu1 %v975_v39 }
 0x3d1   :  { %3773 = vmatprep.subr.mxu0 %v973_v36 }
 0x3d2   :  { %3774 = vmatpush3.msra.mxu0 %v973_v36 }
 0x3d3   :  { %3775 = vmatprep.subr.mxu0 %v972_v14 }
 0x3d4   :  { %3776 = vmatpush3.msra.mxu0 %v972_v14 }
 0x3d5   :  { %3777 = vmatprep.subr.mxu0 %v971_v38 }
 0x3d6   :  { %3778 = vmatpush3.msra.mxu0 %v971_v38 }
 0x3d7   :  { %3779 = vmatprep.subr.mxu0 %v970_v29 }
 0x3d8   :  { %3780 = vmatpush3.msra.mxu0 %v970_v29 }
 0x3d9   :  { %3781 = vmatprep.subr.mxu0 %v969_v3 }
 0x3da   :  { %3782 = vmatpush3.msra.mxu0 %v969_v3 }
 0x3db   :  { %3783 = vmatprep.subr.mxu0 %v968_v0 }
 0x3dc   :  { %3784 = vmatpush3.msra.mxu0 %v968_v0 }
 0x3dd   :  { %3785 = vmatprep.subr.mxu0 %v967_v30 }
 0x3de   :  { %3786 = vmatpush3.msra.mxu0 %v967_v30 }
 0x3df   :  { %3787 = vmatprep.subr.mxu0 %v966_v54 }
 0x3e0   :  { %3788 = vmatpush3.msra.mxu0 %v966_v54 }
 0x3e1   :  { %3789 = vmatprep.subr.mxu0 %v5229_v5 }
 0x3e2   :  { %3790 = vmatpush3.msra.mxu0 %v5229_v5 }
 0x3e3   :  { %3791 = vmatprep.subr.mxu0 %v5224_v40 }
 0x3e4   :  { %3792 = vmatpush3.msra.mxu0 %v5224_v40 }
 0x3e5   :  { %3793 = vmatprep.subr.mxu0 %v5215_v63 }
 0x3e6   :  { %3794 = vmatpush3.msra.mxu0 %v5215_v63 }
 0x3e7   :  { %3795 = vmatprep.subr.mxu0 %v5210_v44 }
 0x3e8   :  { %3796 = vmatpush3.msra.mxu0 %v5210_v44 }
 0x3e9   :  { %3797 = vmatprep.subr.mxu0 %v5201_v57 }
 0x3ea   :  { %3798 = vmatpush3.msra.mxu0 %v5201_v57 }
 0x3eb   :  { %3799 = vmatprep.subr.mxu0 %v5196_v50 }
 0x3ec   :  { %3800 = vmatpush3.msra.mxu0 %v5196_v50 }
 0x3ed   :  { %3802 = vmatmul.mubr.f32.vlgmr.msra.gmra.mxu0 %v4989_v45 }
 0x3ee   :  { %3804 = vmatprep.mubr.f32.mxu0 %v4984_v11 }
 0x3f1   :  { %3805 = vmatmul.mubr.f32.gmra.mxu0 %v4979_v13 }
 0x3f2   :  { %3807 = vmatprep.mubr.f32.mxu0 %v4974_v42 }
 0x3f5   :  { %3808 = vmatmul.mubr.f32.gmra.mxu0 %v4969_v46 }
 0x3f6   :  { %3810 = vmatprep.mubr.f32.mxu0 %v4964_v22 }
 0x3f9   :  { %3811 = vmatmul.mubr.f32.gmra.mxu0 %v4959_v21 }
 0x3fa   :  { %3813 = vmatprep.mubr.f32.mxu0 %v4954_v60 }
 0x3fd   :  { %3814 = vmatmul.mubr.f32.gmra.mxu0 %v4949_v8 }
 0x3fe   :  { %3816 = vmatprep.mubr.f32.mxu0 %v4944_v33 }
 0x401   :  { %3817 = vmatmul.mubr.f32.gmra.mxu0 %v4939_v35 }
 0x402   :  { %3819 = vmatprep.mubr.f32.mxu0 %v4934_v17 }
 0x405   :  { %3820 = vmatmul.mubr.f32.gmra.mxu0 %v4929_v16 }
 0x406   :  { %3822 = vmatprep.mubr.f32.mxu0 %v4925_v32 }
 0x409   :  { %3823 = vmatmul.mubr.f32.gmra.mxu0 %v4921_v61 }
 0x474   :  { %v5291_v46 = vpop.f32.mrf.mxu1 }
 0x476   :  { %v5293_v22 = vpop.f32.mrf.mxu1 }
 0x477   :  { %3913 = vmatprep.mubr.f32.mxu0 %v5293_v22 }
 0x478   :  { %v5304_v16 = vpop.f32.mrf.mxu1 }
 0x47a   :  { %v5310_v21 = vpop.f32.mrf.mxu1 }
 0x47c   :  { %v5316_v11 = vpop.f32.mrf.mxu1 }
 0x47e   :  { %v5322_v57 = vpop.f32.mrf.mxu1 }
 0x480   :  { %v5328_v40 = vpop.f32.mrf.mxu1 }
 0x482   :  { %v5335_v30 = vpop.f32.mrf.mxu1 }
 0x484   :  { %v3871_v37 = vpop.f32.mrf.mxu1 }
 0x486   :  { %v1227_v0 = vpop.f32.mrf.mxu1 }
 0x488   :  { %v3874_v41 = vpop.f32.mrf.mxu1 }
 0x48a   :  { %v1237_v3 = vpop.f32.mrf.mxu1 }
 0x48c   :  { %v3877_v9 = vpop.f32.mrf.mxu1 }
 0x48e   :  { %v1247_v23 = vpop.f32.mrf.mxu1 }
 0x490   :  { %v3880_v47 = vpop.f32.mrf.mxu1 }
 0x492   :  { %v1257_v7 = vpop.f32.mrf.mxu1 }
 0x4ad   :  { %v5296_v60 = vpop.f32.mrf.mxu0 }
 0x4af   :  { %v1042_v8 = vpop.f32.mrf.mxu0 }
 0x4b0   :  { %3969 = vmatprep.mubr.f32.mxu1 %v1042_v8 }
 0x4b1   :  { %v5298_v33 = vpop.f32.mrf.mxu0 }
 0x4b3   :  { %v5300_v35 = vpop.f32.mrf.mxu0 }
 0x4b5   :  { %v5302_v17 = vpop.f32.mrf.mxu0 }
 0x4b7   :  { %v5306_v32 = vpop.f32.mrf.mxu0 }
 0x4b9   :  { %v5308_v61 = vpop.f32.mrf.mxu0 }
 0x4bb   :  { %v5312_v42 = vpop.f32.mrf.mxu0 }
 0x4bd   :  { %v5314_v13 = vpop.f32.mrf.mxu0 }
 0x4bf   :  { %v5318_v45 = vpop.f32.mrf.mxu0 }
 0x4c1   :  { %v5320_v50 = vpop.f32.mrf.mxu0 }
 0x4c3   :  { %v5324_v44 = vpop.f32.mrf.mxu0 }
 0x4c5   :  { %v5326_v63 = vpop.f32.mrf.mxu0 }
 0x4c7   :  { %v5330_v5 = vpop.f32.mrf.mxu0 }
 0x4c9   :  { %v5332_v54 = vpop.f32.mrf.mxu0 }
 0x4ca   :  { %3881 = vmatprep.subr.mxu0 %v5332_v54 }
 0x4cb   :  { %v5337_v31 = vpop.f32.mrf.mxu0  ;;  %3882 = vmatpush3.msra.mxu0 %v5332_v54 }
 0x4cc   :  { %3883 = vmatprep.subr.mxu0 %v5337_v31 }
 0x4cd   :  { %3884 = vmatpush3.msra.mxu0 %v5337_v31 }
 0x4ce   :  { %3885 = vmatprep.subr.mxu0 %v5326_v63 }
 0x4cf   :  { %3886 = vmatpush3.msra.mxu0 %v5326_v63 }
 0x4d0   :  { %3887 = vmatprep.subr.mxu0 %v5330_v5 }
 0x4d1   :  { %3888 = vmatpush3.msra.mxu0 %v5330_v5 }
 0x4d2   :  { %3889 = vmatprep.subr.mxu0 %v5320_v50 }
 0x4d3   :  { %3890 = vmatpush3.msra.mxu0 %v5320_v50 }
 0x4d4   :  { %3891 = vmatprep.subr.mxu0 %v5324_v44 }
 0x4d5   :  { %3892 = vmatpush3.msra.mxu0 %v5324_v44 }
 0x4d6   :  { %3893 = vmatprep.subr.mxu0 %v5314_v13 }
 0x4d7   :  { %3894 = vmatpush3.msra.mxu0 %v5314_v13 }
 0x4d8   :  { %3895 = vmatprep.subr.mxu0 %v5318_v45 }
 0x4d9   :  { %3896 = vmatpush3.msra.mxu0 %v5318_v45 }
 0x4da   :  { %3897 = vmatprep.subr.mxu0 %v5308_v61 }
 0x4db   :  { %3898 = vmatpush3.msra.mxu0 %v5308_v61 }
 0x4dc   :  { %3899 = vmatprep.subr.mxu0 %v5312_v42 }
 0x4dd   :  { %3900 = vmatpush3.msra.mxu0 %v5312_v42 }
 0x4de   :  { %3901 = vmatprep.subr.mxu0 %v5302_v17 }
 0x4df   :  { %3902 = vmatpush3.msra.mxu0 %v5302_v17 }
 0x4e0   :  { %3903 = vmatprep.subr.mxu0 %v5306_v32 }
 0x4e1   :  { %3904 = vmatpush3.msra.mxu0 %v5306_v32 }
 0x4e2   :  { %3905 = vmatprep.subr.mxu0 %v5298_v33 }
 0x4e3   :  { %3906 = vmatpush3.msra.mxu0 %v5298_v33 }
 0x4e4   :  { %3907 = vmatprep.subr.mxu0 %v5300_v35 }
 0x4e5   :  { %3908 = vmatpush3.msra.mxu0 %v5300_v35 }
 0x4e6   :  { %3909 = vmatprep.subr.mxu0 %v5296_v60 }
 0x4e7   :  { %3910 = vmatpush3.msra.mxu0 %v5296_v60 }
 0x4e8   :  { %3911 = vmatprep.subr.mxu0 %v1042_v8 }
 0x4e9   :  { %3912 = vmatpush3.msra.mxu0 %v1042_v8 }
 0x4ea   :  { %3914 = vmatmul.mubr.f32.vlgmr.msra.gmra.mxu0 %v5291_v46  ;;  %3993 = vmatprep.subr.mxu0 %v3880_v47 }
 0x4eb   :  { %3916 = vmatprep.mubr.f32.mxu0 %v5310_v21  ;;  %3994 = vmatpush3.msra.mxu0 %v3880_v47 }
 0x4ec   :  { %3995 = vmatprep.subr.mxu0 %v1257_v7 }
 0x4ed   :  { %3996 = vmatpush3.msra.mxu0 %v1257_v7 }
 0x4ee   :  { %3917 = vmatmul.mubr.f32.gmra.mxu0 %v5304_v16  ;;  %3997 = vmatprep.subr.mxu0 %v3877_v9 }
 0x4ef   :  { %3919 = vmatprep.mubr.f32.mxu0 %v5322_v57  ;;  %3998 = vmatpush3.msra.mxu0 %v3877_v9 }
 0x4f0   :  { %3999 = vmatprep.subr.mxu0 %v1247_v23 }
 0x4f1   :  { %4000 = vmatpush3.msra.mxu0 %v1247_v23 }
 0x4f2   :  { %3920 = vmatmul.mubr.f32.gmra.mxu0 %v5316_v11  ;;  %4001 = vmatprep.subr.mxu0 %v3874_v41 }
 0x4f3   :  { %3922 = vmatprep.mubr.f32.mxu0 %v5335_v30  ;;  %4002 = vmatpush3.msra.mxu0 %v3874_v41 }
 0x4f4   :  { %4003 = vmatprep.subr.mxu0 %v1237_v3 }
 0x4f5   :  { %4004 = vmatpush3.msra.mxu0 %v1237_v3 }
 0x4f6   :  { %3923 = vmatmul.mubr.f32.gmra.mxu0 %v5328_v40  ;;  %4005 = vmatprep.subr.mxu0 %v3871_v37 }
 0x4f7   :  { %3925 = vmatprep.mubr.f32.mxu0 %v1227_v0  ;;  %4006 = vmatpush3.msra.mxu0 %v3871_v37 }
 0x4f8   :  { %4007 = vmatprep.subr.mxu0 %v1227_v0 }
 0x4f9   :  { %4008 = vmatpush3.msra.mxu0 %v1227_v0 }
 0x4fa   :  { %3926 = vmatmul.mubr.f32.gmra.mxu0 %v3871_v37  ;;  %4009 = vmatprep.subr.mxu0 %v5328_v40 }
 0x4fb   :  { %3928 = vmatprep.mubr.f32.mxu0 %v1237_v3  ;;  %4010 = vmatpush3.msra.mxu0 %v5328_v40 }
 0x4fc   :  { %4011 = vmatprep.subr.mxu0 %v5335_v30 }
 0x4fd   :  { %4012 = vmatpush3.msra.mxu0 %v5335_v30 }
 0x4fe   :  { %3929 = vmatmul.mubr.f32.gmra.mxu0 %v3874_v41  ;;  %4013 = vmatprep.subr.mxu0 %v5316_v11 }
 0x4ff   :  { %3931 = vmatprep.mubr.f32.mxu0 %v1247_v23  ;;  %4014 = vmatpush3.msra.mxu0 %v5316_v11 }
 0x500   :  { %4015 = vmatprep.subr.mxu0 %v5322_v57 }
 0x501   :  { %4016 = vmatpush3.msra.mxu0 %v5322_v57 }
 0x502   :  { %3932 = vmatmul.mubr.f32.gmra.mxu0 %v3877_v9  ;;  %4017 = vmatprep.subr.mxu0 %v5304_v16 }
 0x503   :  { %3934 = vmatprep.mubr.f32.mxu0 %v1257_v7  ;;  %4018 = vmatpush3.msra.mxu0 %v5304_v16 }
 0x504   :  { %4019 = vmatprep.subr.mxu0 %v5310_v21 }
 0x505   :  { %4020 = vmatpush3.msra.mxu0 %v5310_v21 }
 0x506   :  { %3935 = vmatmul.mubr.f32.gmra.mxu0 %v3880_v47  ;;  %4021 = vmatprep.subr.mxu0 %v5291_v46 }
 0x507   :  { %4022 = vmatpush3.msra.mxu0 %v5291_v46 }
 0x508   :  { %4023 = vmatprep.subr.mxu0 %v5293_v22 }
 0x509   :  { %4024 = vmatpush3.msra.mxu0 %v5293_v22 }
 0x5aa   :  { %v3915_v34 = vpop.f32.mrf.mxu0 }
 0x5ab   :  { %v1412_v62 = vsub.f32 %v5183_v51, %v3915_v34 }
 0x5ac   :  { %v1332_v29 = vpop.f32.mrf.mxu0 }
 0x5ad   :  { %v1411_v38 = vsub.f32 %v5186_v55, %v1332_v29  ;;  %v5395_v43 = vmul.f32 0.5, %v1412_v62 }
 0x5ae   :  { %v3918_v1 = vpop.f32.mrf.mxu0 }
 0x5af   :  { %v5393_v18 = vmul.f32 0.5, %v1411_v38  ;;  %v1414_v59 = vsub.f32 %v5189_v49, %v3918_v1 }
 0x5b0   :  { %v1342_v12 = vpop.f32.mrf.mxu0 }
 0x5b1   :  { %v1413_v14 = vsub.f32 %v5193_v19, %v1342_v12  ;;  %4025 = vmatprep.mubr.f32.mxu0 %v5393_v18  ;;  %v5403_v6 = vmul.f32 0.5, %v1414_v59 }
 0x5b2   :  { %v3921_v25 = vpop.f32.mrf.mxu0  ;;  %4026 = vmatmul.mubr.f32.vlgmr.msra.gmra.mxu0 %v5395_v43 }
 0x5b3   :  { %v5401_v36 = vmul.f32 0.5, %v1413_v14  ;;  %v1416_v39 = vsub.f32 %v5199_v56, %v3921_v25 }
 0x5b4   :  { %v1352_v52 = vpop.f32.mrf.mxu0 }
 0x5b5   :  { %v1415_v26 = vsub.f32 %v5205_v27, %v1352_v52  ;;  %4028 = vmatprep.mubr.f32.mxu0 %v5401_v36  ;;  %v1432_v8 = vmul.f32 0.5, %v1416_v39 }
 0x5b6   :  { %v3924_v46 = vpop.f32.mrf.mxu0  ;;  %4029 = vmatmul.mubr.f32.gmra.mxu0 %v5403_v6 }
 0x5b7   :  { %v5409_v22 = vmul.f32 0.5, %v1415_v26  ;;  %v1418_v16 = vsub.f32 %v5213_v20, %v3924_v46 }
 0x5b8   :  { %v1362_v21 = vpop.f32.mrf.mxu0 }
 0x5b9   :  { %v1417_v11 = vsub.f32 %v5219_v15, %v1362_v21  ;;  %4031 = vmatprep.mubr.f32.mxu0 %v5409_v22  ;;  %v1434_v30 = vmul.f32 0.5, %v1418_v16 }
 0x5ba   :  { %v3927_v57 = vpop.f32.mrf.mxu0  ;;  %4032 = vmatmul.mubr.f32.gmra.mxu0 %v1432_v8 }
 0x5bb   :  { %v1433_v40 = vmul.f32 0.5, %v1417_v11  ;;  %v1420_v37 = vsub.f32 %v5227_v4, %v3927_v57 }
 0x5bc   :  { %v1372_v0 = vpop.f32.mrf.mxu0 }
 0x5bd   :  { %v1419_v41 = vsub.f32 %v5233_v10, %v1372_v0  ;;  %4034 = vmatprep.mubr.f32.mxu0 %v1433_v40  ;;  %v1436_v23 = vmul.f32 0.5, %v1420_v37 }
 0x5be   :  { %v3930_v3 = vpop.f32.mrf.mxu0  ;;  %4035 = vmatmul.mubr.f32.gmra.mxu0 %v1434_v30 }
 0x5bf   :  { %v1435_v9 = vmul.f32 0.5, %v1419_v41  ;;  %v1422_v47 = vsub.f32 %v5239_v53, %v3930_v3 }
 0x5c0   :  { %v1382_v7 = vpop.f32.mrf.mxu0 }
 0x5c1   :  { %v1421_v34 = vsub.f32 %v5243_v28, %v1382_v7  ;;  %4037 = vmatprep.mubr.f32.mxu0 %v1435_v9  ;;  %v1438_v38 = vmul.f32 0.5, %v1422_v47 }
 0x5c2   :  { %v3933_v62 = vpop.f32.mrf.mxu0  ;;  %4038 = vmatmul.mubr.f32.gmra.mxu0 %v1436_v23 }
 0x5c3   :  { %v1437_v29 = vmul.f32 0.5, %v1421_v34  ;;  %v1424_v1 = vsub.f32 %v5247_v58, %v3933_v62 }
 0x5c4   :  { %v1392_v59 = vpop.f32.mrf.mxu0 }
 0x5c5   :  { %v1423_v12 = vsub.f32 %v5251_v24, %v1392_v59  ;;  %4040 = vmatprep.mubr.f32.mxu0 %v1437_v29  ;;  %v1440_v52 = vmul.f32 0.5, %v1424_v1 }
 0x5c6   :  { %v3936_v14 = vpop.f32.mrf.mxu0  ;;  %4041 = vmatmul.mubr.f32.gmra.mxu0 %v1438_v38 }
 0x5c7   :  { %v1439_v25 = vmul.f32 0.5, %v1423_v12  ;;  %v1426_v39 = vsub.f32 %v5255_v48, %v3936_v14 }
 0x5c8   :  { %v1402_v26 = vpop.f32.mrf.mxu0 }
 0x5c9   :  { %v1442_v46 = vmul.f32 0.5, %v1426_v39  ;;  %v1425_v16 = vsub.f32 %v5259_v2, %v1402_v26  ;;  %4043 = vmatprep.mubr.f32.mxu0 %v1439_v25 }
 0x5ca   :  { %4044 = vmatmul.mubr.f32.gmra.mxu0 %v1440_v52 }
 0x5cb   :  { %v1441_v21 = vmul.f32 0.5, %v1425_v16  ;;  %3937 = vmatprep.subr.mxu1 %v1442_v46 }
 0x5cc   :  { %3938 = vmatpush3.msra.mxu1 %v1442_v46 }
 0x5cd   :  { %3939 = vmatprep.subr.mxu1 %v1441_v21  ;;  %4046 = vmatprep.mubr.f32.mxu0 %v1441_v21 }
 0x5ce   :  { %3940 = vmatpush3.msra.mxu1 %v1441_v21  ;;  %4047 = vmatmul.mubr.f32.gmra.mxu0 %v1442_v46 }
 0x5cf   :  { %3941 = vmatprep.subr.mxu1 %v1440_v52 }
 0x5d0   :  { %3942 = vmatpush3.msra.mxu1 %v1440_v52 }
 0x5d1   :  { %3943 = vmatprep.subr.mxu1 %v1439_v25 }
 0x5d2   :  { %3944 = vmatpush3.msra.mxu1 %v1439_v25 }
 0x5d3   :  { %3945 = vmatprep.subr.mxu1 %v1438_v38 }
 0x5d4   :  { %3946 = vmatpush3.msra.mxu1 %v1438_v38 }
 0x5d5   :  { %3947 = vmatprep.subr.mxu1 %v1437_v29 }
 0x5d6   :  { %3948 = vmatpush3.msra.mxu1 %v1437_v29 }
 0x5d7   :  { %3949 = vmatprep.subr.mxu1 %v1436_v23 }
 0x5d8   :  { %3950 = vmatpush3.msra.mxu1 %v1436_v23 }
 0x5d9   :  { %3951 = vmatprep.subr.mxu1 %v1435_v9 }
 0x5da   :  { %3952 = vmatpush3.msra.mxu1 %v1435_v9 }
 0x5db   :  { %3953 = vmatprep.subr.mxu1 %v1434_v30 }
 0x5dc   :  { %3954 = vmatpush3.msra.mxu1 %v1434_v30 }
 0x5dd   :  { %3955 = vmatprep.subr.mxu1 %v1433_v40 }
 0x5de   :  { %3956 = vmatpush3.msra.mxu1 %v1433_v40 }
 0x5df   :  { %3957 = vmatprep.subr.mxu1 %v1432_v8 }
 0x5e0   :  { %3958 = vmatpush3.msra.mxu1 %v1432_v8 }
 0x5e1   :  { %3959 = vmatprep.subr.mxu1 %v5409_v22 }
 0x5e2   :  { %3960 = vmatpush3.msra.mxu1 %v5409_v22 }
 0x5e3   :  { %3961 = vmatprep.subr.mxu1 %v5403_v6 }
 0x5e4   :  { %3962 = vmatpush3.msra.mxu1 %v5403_v6 }
 0x5e5   :  { %3963 = vmatprep.subr.mxu1 %v5401_v36 }
 0x5e6   :  { %3964 = vmatpush3.msra.mxu1 %v5401_v36 }
 0x5e7   :  { %3965 = vmatprep.subr.mxu1 %v5395_v43 }
 0x5e8   :  { %3966 = vmatpush3.msra.mxu1 %v5395_v43 }
 0x5e9   :  { %3967 = vmatprep.subr.mxu1 %v5393_v18 }
 0x5ea   :  { %3968 = vmatpush3.msra.mxu1 %v5393_v18 }
 0x5eb   :  { %3970 = vmatmul.mubr.f32.vlgmr.msra.gmra.mxu1 %v5296_v60 }
 0x5ec   :  { %3972 = vmatprep.mubr.f32.mxu1 %v5300_v35 }
 0x5ef   :  { %3973 = vmatmul.mubr.f32.gmra.mxu1 %v5298_v33 }
 0x5f0   :  { %3975 = vmatprep.mubr.f32.mxu1 %v5306_v32 }
 0x5f3   :  { %3976 = vmatmul.mubr.f32.gmra.mxu1 %v5302_v17 }
 0x5f4   :  { %3978 = vmatprep.mubr.f32.mxu1 %v5312_v42 }
 0x5f7   :  { %3979 = vmatmul.mubr.f32.gmra.mxu1 %v5308_v61 }
 0x5f8   :  { %3981 = vmatprep.mubr.f32.mxu1 %v5318_v45 }
 0x5fb   :  { %3982 = vmatmul.mubr.f32.gmra.mxu1 %v5314_v13 }
 0x5fc   :  { %3984 = vmatprep.mubr.f32.mxu1 %v5324_v44 }
 0x5ff   :  { %3985 = vmatmul.mubr.f32.gmra.mxu1 %v5320_v50 }
 0x600   :  { %3987 = vmatprep.mubr.f32.mxu1 %v5330_v5 }
 0x603   :  { %3988 = vmatmul.mubr.f32.gmra.mxu1 %v5326_v63 }
 0x604   :  { %3990 = vmatprep.mubr.f32.mxu1 %v5337_v31 }
 0x607   :  { %3991 = vmatmul.mubr.f32.gmra.mxu1 %v5332_v54 }
 0x672   :  { %v5447_v60 = vpop.f32.mrf.mxu0 }
 0x674   :  { %v5449_v33 = vpop.f32.mrf.mxu0 }
 0x675   :  { %4081 = vmatprep.mubr.f32.mxu1 %v5449_v33 }
 0x676   :  { %v5460_v13 = vpop.f32.mrf.mxu0 }
 0x678   :  { %v5466_v44 = vpop.f32.mrf.mxu0 }
 0x67a   :  { %v5472_v54 = vpop.f32.mrf.mxu0 }
 0x67c   :  { %v5478_v43 = vpop.f32.mrf.mxu0 }
 0x67e   :  { %v5484_v22 = vpop.f32.mrf.mxu0 }
 0x680   :  { %v5491_v57 = vpop.f32.mrf.mxu0 }
 0x682   :  { %v4039_v30 = vpop.f32.mrf.mxu0 }
 0x684   :  { %v1694_v37 = vpop.f32.mrf.mxu0 }
 0x686   :  { %v4042_v0 = vpop.f32.mrf.mxu0 }
 0x688   :  { %v1704_v41 = vpop.f32.mrf.mxu0 }
 0x68a   :  { %v4045_v3 = vpop.f32.mrf.mxu0 }
 0x68c   :  { %v1714_v9 = vpop.f32.mrf.mxu0 }
 0x68e   :  { %v4048_v23 = vpop.f32.mrf.mxu0 }
 0x690   :  { %v1724_v47 = vpop.f32.mrf.mxu0 }
 0x6ab   :  { %v5452_v35 = vpop.f32.mrf.mxu1 }
 0x6ad   :  { %v1509_v17 = vpop.f32.mrf.mxu1 }
 0x6ae   :  { %4137 = vmatprep.mubr.f32.mxu0 %v1509_v17 }
 0x6af   :  { %v5454_v32 = vpop.f32.mrf.mxu1 }
 0x6b1   :  { %v5456_v61 = vpop.f32.mrf.mxu1 }
 0x6b3   :  { %v5458_v42 = vpop.f32.mrf.mxu1 }
 0x6b5   :  { %v5462_v45 = vpop.f32.mrf.mxu1 }
 0x6b7   :  { %v5464_v50 = vpop.f32.mrf.mxu1 }
 0x6b9   :  { %v5468_v63 = vpop.f32.mrf.mxu1 }
 0x6bb   :  { %v5470_v5 = vpop.f32.mrf.mxu1 }
 0x6bd   :  { %v5474_v31 = vpop.f32.mrf.mxu1 }
 0x6bf   :  { %v5476_v18 = vpop.f32.mrf.mxu1 }
 0x6c1   :  { %v5480_v36 = vpop.f32.mrf.mxu1 }
 0x6c3   :  { %v5482_v6 = vpop.f32.mrf.mxu1 }
 0x6c5   :  { %v5486_v8 = vpop.f32.mrf.mxu1 }
 0x6c7   :  { %v5488_v11 = vpop.f32.mrf.mxu1 }
 0x6c8   :  { %4049 = vmatprep.subr.mxu1 %v5488_v11 }
 0x6c9   :  { %v5493_v40 = vpop.f32.mrf.mxu1  ;;  %4050 = vmatpush3.msra.mxu1 %v5488_v11 }
 0x6ca   :  { %4051 = vmatprep.subr.mxu1 %v5493_v40 }
 0x6cb   :  { %4052 = vmatpush3.msra.mxu1 %v5493_v40 }
 0x6cc   :  { %4053 = vmatprep.subr.mxu1 %v5482_v6 }
 0x6cd   :  { %4054 = vmatpush3.msra.mxu1 %v5482_v6 }
 0x6ce   :  { %4055 = vmatprep.subr.mxu1 %v5486_v8 }
 0x6cf   :  { %4056 = vmatpush3.msra.mxu1 %v5486_v8 }
 0x6d0   :  { %4057 = vmatprep.subr.mxu1 %v5476_v18 }
 0x6d1   :  { %4058 = vmatpush3.msra.mxu1 %v5476_v18 }
 0x6d2   :  { %4059 = vmatprep.subr.mxu1 %v5480_v36 }
 0x6d3   :  { %4060 = vmatpush3.msra.mxu1 %v5480_v36 }
 0x6d4   :  { %4061 = vmatprep.subr.mxu1 %v5470_v5 }
 0x6d5   :  { %4062 = vmatpush3.msra.mxu1 %v5470_v5 }
 0x6d6   :  { %4063 = vmatprep.subr.mxu1 %v5474_v31 }
 0x6d7   :  { %4064 = vmatpush3.msra.mxu1 %v5474_v31 }
 0x6d8   :  { %4065 = vmatprep.subr.mxu1 %v5464_v50 }
 0x6d9   :  { %4066 = vmatpush3.msra.mxu1 %v5464_v50 }
 0x6da   :  { %4067 = vmatprep.subr.mxu1 %v5468_v63 }
 0x6db   :  { %4068 = vmatpush3.msra.mxu1 %v5468_v63 }
 0x6dc   :  { %4069 = vmatprep.subr.mxu1 %v5458_v42 }
 0x6dd   :  { %4070 = vmatpush3.msra.mxu1 %v5458_v42 }
 0x6de   :  { %4071 = vmatprep.subr.mxu1 %v5462_v45 }
 0x6df   :  { %4072 = vmatpush3.msra.mxu1 %v5462_v45 }
 0x6e0   :  { %4073 = vmatprep.subr.mxu1 %v5454_v32 }
 0x6e1   :  { %4074 = vmatpush3.msra.mxu1 %v5454_v32 }
 0x6e2   :  { %4075 = vmatprep.subr.mxu1 %v5456_v61 }
 0x6e3   :  { %4076 = vmatpush3.msra.mxu1 %v5456_v61 }
 0x6e4   :  { %4077 = vmatprep.subr.mxu1 %v5452_v35 }
 0x6e5   :  { %4078 = vmatpush3.msra.mxu1 %v5452_v35 }
 0x6e6   :  { %4079 = vmatprep.subr.mxu1 %v1509_v17 }
 0x6e7   :  { %4080 = vmatpush3.msra.mxu1 %v1509_v17 }
 0x6e8   :  { %4082 = vmatmul.mubr.f32.vlgmr.msra.gmra.mxu1 %v5447_v60  ;;  %4161 = vmatprep.subr.mxu1 %v4048_v23 }
 0x6e9   :  { %4084 = vmatprep.mubr.f32.mxu1 %v5466_v44  ;;  %4162 = vmatpush3.msra.mxu1 %v4048_v23 }
 0x6ea   :  { %4163 = vmatprep.subr.mxu1 %v1724_v47 }
 0x6eb   :  { %4164 = vmatpush3.msra.mxu1 %v1724_v47 }
 0x6ec   :  { %4085 = vmatmul.mubr.f32.gmra.mxu1 %v5460_v13  ;;  %4165 = vmatprep.subr.mxu1 %v4045_v3 }
 0x6ed   :  { %4087 = vmatprep.mubr.f32.mxu1 %v5478_v43  ;;  %4166 = vmatpush3.msra.mxu1 %v4045_v3 }
 0x6ee   :  { %4167 = vmatprep.subr.mxu1 %v1714_v9 }
 0x6ef   :  { %4168 = vmatpush3.msra.mxu1 %v1714_v9 }
 0x6f0   :  { %4088 = vmatmul.mubr.f32.gmra.mxu1 %v5472_v54  ;;  %4169 = vmatprep.subr.mxu1 %v4042_v0 }
 0x6f1   :  { %4090 = vmatprep.mubr.f32.mxu1 %v5491_v57  ;;  %4170 = vmatpush3.msra.mxu1 %v4042_v0 }
 0x6f2   :  { %4171 = vmatprep.subr.mxu1 %v1704_v41 }
 0x6f3   :  { %4172 = vmatpush3.msra.mxu1 %v1704_v41 }
 0x6f4   :  { %4091 = vmatmul.mubr.f32.gmra.mxu1 %v5484_v22  ;;  %4173 = vmatprep.subr.mxu1 %v4039_v30 }
 0x6f5   :  { %4093 = vmatprep.mubr.f32.mxu1 %v1694_v37  ;;  %4174 = vmatpush3.msra.mxu1 %v4039_v30 }
 0x6f6   :  { %4175 = vmatprep.subr.mxu1 %v1694_v37 }
 0x6f7   :  { %4176 = vmatpush3.msra.mxu1 %v1694_v37 }
 0x6f8   :  { %4094 = vmatmul.mubr.f32.gmra.mxu1 %v4039_v30  ;;  %4177 = vmatprep.subr.mxu1 %v5484_v22 }
 0x6f9   :  { %4096 = vmatprep.mubr.f32.mxu1 %v1704_v41  ;;  %4178 = vmatpush3.msra.mxu1 %v5484_v22 }
 0x6fa   :  { %4179 = vmatprep.subr.mxu1 %v5491_v57 }
 0x6fb   :  { %4180 = vmatpush3.msra.mxu1 %v5491_v57 }
 0x6fc   :  { %4097 = vmatmul.mubr.f32.gmra.mxu1 %v4042_v0  ;;  %4181 = vmatprep.subr.mxu1 %v5472_v54 }
 0x6fd   :  { %4099 = vmatprep.mubr.f32.mxu1 %v1714_v9  ;;  %4182 = vmatpush3.msra.mxu1 %v5472_v54 }
 0x6fe   :  { %4183 = vmatprep.subr.mxu1 %v5478_v43 }
 0x6ff   :  { %4184 = vmatpush3.msra.mxu1 %v5478_v43 }
 0x700   :  { %4100 = vmatmul.mubr.f32.gmra.mxu1 %v4045_v3  ;;  %4185 = vmatprep.subr.mxu1 %v5460_v13 }
 0x701   :  { %4102 = vmatprep.mubr.f32.mxu1 %v1724_v47  ;;  %4186 = vmatpush3.msra.mxu1 %v5460_v13 }
 0x702   :  { %4187 = vmatprep.subr.mxu1 %v5466_v44 }
 0x703   :  { %4188 = vmatpush3.msra.mxu1 %v5466_v44 }
 0x704   :  { %4103 = vmatmul.mubr.f32.gmra.mxu1 %v4048_v23  ;;  %4189 = vmatprep.subr.mxu1 %v5447_v60 }
 0x705   :  { %4190 = vmatpush3.msra.mxu1 %v5447_v60 }
 0x706   :  { %4191 = vmatprep.subr.mxu1 %v5449_v33 }
 0x707   :  { %4192 = vmatpush3.msra.mxu1 %v5449_v33 }
 0x7a8   :  { %v4083_v7 = vpop.f32.mrf.mxu1 }
 0x7a9   :  { %v1879_v34 = vsub.f32 %v5183_v51, %v4083_v7 }
 0x7aa   :  { %v1799_v62 = vpop.f32.mrf.mxu1 }
 0x7ab   :  { %v1878_v29 = vsub.f32 %v5186_v55, %v1799_v62  ;;  %v5551_v59 = vmul.f32 0.5, %v1879_v34 }
 0x7ac   :  { %v4086_v38 = vpop.f32.mrf.mxu1 }
 0x7ad   :  { %v5549_v1 = vmul.f32 0.5, %v1878_v29  ;;  %v1881_v12 = vsub.f32 %v5189_v49, %v4086_v38 }
 0x7ae   :  { %v1809_v14 = vpop.f32.mrf.mxu1 }
 0x7af   :  { %v1880_v25 = vsub.f32 %v5193_v19, %v1809_v14  ;;  %4193 = vmatprep.mubr.f32.mxu1 %v5549_v1  ;;  %v5559_v26 = vmul.f32 0.5, %v1881_v12 }
 0x7b0   :  { %v4089_v39 = vpop.f32.mrf.mxu1  ;;  %4194 = vmatmul.mubr.f32.vlgmr.msra.gmra.mxu1 %v5551_v59 }
 0x7b1   :  { %v5557_v52 = vmul.f32 0.5, %v1880_v25  ;;  %v1883_v46 = vsub.f32 %v5199_v56, %v4089_v39 }
 0x7b2   :  { %v1819_v16 = vpop.f32.mrf.mxu1 }
 0x7b3   :  { %v1882_v21 = vsub.f32 %v5205_v27, %v1819_v16  ;;  %4196 = vmatprep.mubr.f32.mxu1 %v5557_v52  ;;  %v1899_v17 = vmul.f32 0.5, %v1883_v46 }
 0x7b4   :  { %v4092_v60 = vpop.f32.mrf.mxu1  ;;  %4197 = vmatmul.mubr.f32.gmra.mxu1 %v5559_v26 }
 0x7b5   :  { %v5565_v33 = vmul.f32 0.5, %v1882_v21  ;;  %v1885_v13 = vsub.f32 %v5213_v20, %v4092_v60 }
 0x7b6   :  { %v1829_v44 = vpop.f32.mrf.mxu1 }
 0x7b7   :  { %v1884_v54 = vsub.f32 %v5219_v15, %v1829_v44  ;;  %4199 = vmatprep.mubr.f32.mxu1 %v5565_v33  ;;  %v1901_v57 = vmul.f32 0.5, %v1885_v13 }
 0x7b8   :  { %v4095_v43 = vpop.f32.mrf.mxu1  ;;  %4200 = vmatmul.mubr.f32.gmra.mxu1 %v1899_v17 }
 0x7b9   :  { %v1900_v22 = vmul.f32 0.5, %v1884_v54  ;;  %v1887_v30 = vsub.f32 %v5227_v4, %v4095_v43 }
 0x7ba   :  { %v1839_v37 = vpop.f32.mrf.mxu1 }
 0x7bb   :  { %v1886_v0 = vsub.f32 %v5233_v10, %v1839_v37  ;;  %4202 = vmatprep.mubr.f32.mxu1 %v1900_v22  ;;  %v1903_v9 = vmul.f32 0.5, %v1887_v30 }
 0x7bc   :  { %v4098_v41 = vpop.f32.mrf.mxu1  ;;  %4203 = vmatmul.mubr.f32.gmra.mxu1 %v1901_v57 }
 0x7bd   :  { %v1902_v3 = vmul.f32 0.5, %v1886_v0  ;;  %v1889_v23 = vsub.f32 %v5239_v53, %v4098_v41 }
 0x7be   :  { %v1849_v47 = vpop.f32.mrf.mxu1 }
 0x7bf   :  { %v1888_v7 = vsub.f32 %v5243_v28, %v1849_v47  ;;  %4205 = vmatprep.mubr.f32.mxu1 %v1902_v3  ;;  %v1905_v29 = vmul.f32 0.5, %v1889_v23 }
 0x7c0   :  { %v4101_v34 = vpop.f32.mrf.mxu1  ;;  %4206 = vmatmul.mubr.f32.gmra.mxu1 %v1903_v9 }
 0x7c1   :  { %v1904_v62 = vmul.f32 0.5, %v1888_v7  ;;  %v1891_v38 = vsub.f32 %v5247_v58, %v4101_v34 }
 0x7c2   :  { %v1859_v12 = vpop.f32.mrf.mxu1 }
 0x7c3   :  { %v1890_v14 = vsub.f32 %v5251_v24, %v1859_v12  ;;  %4208 = vmatprep.mubr.f32.mxu1 %v1904_v62  ;;  %v1907_v16 = vmul.f32 0.5, %v1891_v38 }
 0x7c4   :  { %v4104_v25 = vpop.f32.mrf.mxu1  ;;  %4209 = vmatmul.mubr.f32.gmra.mxu1 %v1905_v29 }
 0x7c5   :  { %v1906_v39 = vmul.f32 0.5, %v1890_v14  ;;  %v1893_v46 = vsub.f32 %v5255_v48, %v4104_v25 }
 0x7c6   :  { %v1869_v21 = vpop.f32.mrf.mxu1 }
 0x7c7   :  { %v1909_v60 = vmul.f32 0.5, %v1893_v46  ;;  %v1892_v13 = vsub.f32 %v5259_v2, %v1869_v21  ;;  %4211 = vmatprep.mubr.f32.mxu1 %v1906_v39 }
 0x7c8   :  { %4212 = vmatmul.mubr.f32.gmra.mxu1 %v1907_v16 }
 0x7c9   :  { %v1908_v44 = vmul.f32 0.5, %v1892_v13  ;;  %4105 = vmatprep.subr.mxu0 %v1909_v60 }
 0x7ca   :  { %4106 = vmatpush3.msra.mxu0 %v1909_v60 }
 0x7cb   :  { %4107 = vmatprep.subr.mxu0 %v1908_v44  ;;  %4214 = vmatprep.mubr.f32.mxu1 %v1908_v44 }
 0x7cc   :  { %4108 = vmatpush3.msra.mxu0 %v1908_v44  ;;  %4215 = vmatmul.mubr.f32.gmra.mxu1 %v1909_v60 }
 0x7cd   :  { %4109 = vmatprep.subr.mxu0 %v1907_v16 }
 0x7ce   :  { %4110 = vmatpush3.msra.mxu0 %v1907_v16 }
 0x7cf   :  { %4111 = vmatprep.subr.mxu0 %v1906_v39 }
 0x7d0   :  { %4112 = vmatpush3.msra.mxu0 %v1906_v39 }
 0x7d1   :  { %4113 = vmatprep.subr.mxu0 %v1905_v29 }
 0x7d2   :  { %4114 = vmatpush3.msra.mxu0 %v1905_v29 }
 0x7d3   :  { %4115 = vmatprep.subr.mxu0 %v1904_v62 }
 0x7d4   :  { %4116 = vmatpush3.msra.mxu0 %v1904_v62 }
 0x7d5   :  { %4117 = vmatprep.subr.mxu0 %v1903_v9 }
 0x7d6   :  { %4118 = vmatpush3.msra.mxu0 %v1903_v9 }
 0x7d7   :  { %4119 = vmatprep.subr.mxu0 %v1902_v3 }
 0x7d8   :  { %4120 = vmatpush3.msra.mxu0 %v1902_v3 }
 0x7d9   :  { %4121 = vmatprep.subr.mxu0 %v1901_v57 }
 0x7da   :  { %4122 = vmatpush3.msra.mxu0 %v1901_v57 }
 0x7db   :  { %4123 = vmatprep.subr.mxu0 %v1900_v22 }
 0x7dc   :  { %4124 = vmatpush3.msra.mxu0 %v1900_v22 }
 0x7dd   :  { %4125 = vmatprep.subr.mxu0 %v1899_v17 }
 0x7de   :  { %4126 = vmatpush3.msra.mxu0 %v1899_v17 }
 0x7df   :  { %4127 = vmatprep.subr.mxu0 %v5565_v33 }
 0x7e0   :  { %4128 = vmatpush3.msra.mxu0 %v5565_v33 }
 0x7e1   :  { %4129 = vmatprep.subr.mxu0 %v5559_v26 }
 0x7e2   :  { %4130 = vmatpush3.msra.mxu0 %v5559_v26 }
 0x7e3   :  { %4131 = vmatprep.subr.mxu0 %v5557_v52 }
 0x7e4   :  { %4132 = vmatpush3.msra.mxu0 %v5557_v52 }
 0x7e5   :  { %4133 = vmatprep.subr.mxu0 %v5551_v59 }
 0x7e6   :  { %4134 = vmatpush3.msra.mxu0 %v5551_v59 }
 0x7e7   :  { %4135 = vmatprep.subr.mxu0 %v5549_v1 }
 0x7e8   :  { %4136 = vmatpush3.msra.mxu0 %v5549_v1 }
 0x7e9   :  { %4138 = vmatmul.mubr.f32.vlgmr.msra.gmra.mxu0 %v5452_v35 }
 0x7ea   :  { %4140 = vmatprep.mubr.f32.mxu0 %v5456_v61 }
 0x7ed   :  { %4141 = vmatmul.mubr.f32.gmra.mxu0 %v5454_v32 }
 0x7ee   :  { %4143 = vmatprep.mubr.f32.mxu0 %v5462_v45 }
 0x7f1   :  { %4144 = vmatmul.mubr.f32.gmra.mxu0 %v5458_v42 }
 0x7f2   :  { %4146 = vmatprep.mubr.f32.mxu0 %v5468_v63 }
 0x7f5   :  { %4147 = vmatmul.mubr.f32.gmra.mxu0 %v5464_v50 }
 0x7f6   :  { %4149 = vmatprep.mubr.f32.mxu0 %v5474_v31 }
 0x7f9   :  { %4150 = vmatmul.mubr.f32.gmra.mxu0 %v5470_v5 }
 0x7fa   :  { %4152 = vmatprep.mubr.f32.mxu0 %v5480_v36 }
 0x7fd   :  { %4153 = vmatmul.mubr.f32.gmra.mxu0 %v5476_v18 }
 0x7fe   :  { %4155 = vmatprep.mubr.f32.mxu0 %v5486_v8 }
 0x801   :  { %4156 = vmatmul.mubr.f32.gmra.mxu0 %v5482_v6 }
 0x802   :  { %4158 = vmatprep.mubr.f32.mxu0 %v5493_v40 }
 0x805   :  { %4159 = vmatmul.mubr.f32.gmra.mxu0 %v5488_v11 }
 0x870   :  { %v5603_v35 = vpop.f32.mrf.mxu1 }
 0x872   :  { %v5605_v32 = vpop.f32.mrf.mxu1 }
 0x873   :  { %4249 = vmatprep.mubr.f32.mxu0 %v5605_v32 }
 0x874   :  { %v5616_v5 = vpop.f32.mrf.mxu1 }
 0x876   :  { %v5622_v36 = vpop.f32.mrf.mxu1 }
 0x878   :  { %v5628_v11 = vpop.f32.mrf.mxu1 }
 0x87a   :  { %v5634_v59 = vpop.f32.mrf.mxu1 }
 0x87c   :  { %v5640_v33 = vpop.f32.mrf.mxu1 }
 0x87e   :  { %v5647_v43 = vpop.f32.mrf.mxu1 }
 0x880   :  { %v4207_v57 = vpop.f32.mrf.mxu1 }
 0x882   :  { %v2161_v30 = vpop.f32.mrf.mxu1 }
 0x884   :  { %v4210_v37 = vpop.f32.mrf.mxu1 }
 0x886   :  { %v2171_v0 = vpop.f32.mrf.mxu1 }
 0x888   :  { %v4213_v41 = vpop.f32.mrf.mxu1 }
 0x88a   :  { %v2181_v3 = vpop.f32.mrf.mxu1 }
 0x88c   :  { %v4216_v9 = vpop.f32.mrf.mxu1 }
 0x88e   :  { %v2191_v23 = vpop.f32.mrf.mxu1 }
 0x8a9   :  { %v5608_v61 = vpop.f32.mrf.mxu0 }
 0x8ab   :  { %v1976_v42 = vpop.f32.mrf.mxu0 }
 0x8ac   :  { %4305 = vmatprep.mubr.f32.mxu1 %v1976_v42 }
 0x8ad   :  { %v5610_v45 = vpop.f32.mrf.mxu0 }
 0x8af   :  { %v5612_v50 = vpop.f32.mrf.mxu0 }
 0x8b1   :  { %v5614_v63 = vpop.f32.mrf.mxu0 }
 0x8b3   :  { %v5618_v31 = vpop.f32.mrf.mxu0 }
 0x8b5   :  { %v5620_v18 = vpop.f32.mrf.mxu0 }
 0x8b7   :  { %v5624_v6 = vpop.f32.mrf.mxu0 }
 0x8b9   :  { %v5626_v8 = vpop.f32.mrf.mxu0 }
 0x8bb   :  { %v5630_v40 = vpop.f32.mrf.mxu0 }
 0x8bd   :  { %v5632_v1 = vpop.f32.mrf.mxu0 }
 0x8bf   :  { %v5636_v52 = vpop.f32.mrf.mxu0 }
 0x8c1   :  { %v5638_v26 = vpop.f32.mrf.mxu0 }
 0x8c3   :  { %v5642_v17 = vpop.f32.mrf.mxu0 }
 0x8c5   :  { %v5644_v54 = vpop.f32.mrf.mxu0 }
 0x8c6   :  { %4217 = vmatprep.subr.mxu0 %v5644_v54 }
 0x8c7   :  { %v5649_v22 = vpop.f32.mrf.mxu0  ;;  %4218 = vmatpush3.msra.mxu0 %v5644_v54 }
 0x8c8   :  { %4219 = vmatprep.subr.mxu0 %v5649_v22 }
 0x8c9   :  { %4220 = vmatpush3.msra.mxu0 %v5649_v22 }
 0x8ca   :  { %4221 = vmatprep.subr.mxu0 %v5638_v26 }
 0x8cb   :  { %4222 = vmatpush3.msra.mxu0 %v5638_v26 }
 0x8cc   :  { %4223 = vmatprep.subr.mxu0 %v5642_v17 }
 0x8cd   :  { %4224 = vmatpush3.msra.mxu0 %v5642_v17 }
 0x8ce   :  { %4225 = vmatprep.subr.mxu0 %v5632_v1 }
 0x8cf   :  { %4226 = vmatpush3.msra.mxu0 %v5632_v1 }
 0x8d0   :  { %4227 = vmatprep.subr.mxu0 %v5636_v52 }
 0x8d1   :  { %4228 = vmatpush3.msra.mxu0 %v5636_v52 }
 0x8d2   :  { %4229 = vmatprep.subr.mxu0 %v5626_v8 }
 0x8d3   :  { %4230 = vmatpush3.msra.mxu0 %v5626_v8 }
 0x8d4   :  { %4231 = vmatprep.subr.mxu0 %v5630_v40 }
 0x8d5   :  { %4232 = vmatpush3.msra.mxu0 %v5630_v40 }
 0x8d6   :  { %4233 = vmatprep.subr.mxu0 %v5620_v18 }
 0x8d7   :  { %4234 = vmatpush3.msra.mxu0 %v5620_v18 }
 0x8d8   :  { %4235 = vmatprep.subr.mxu0 %v5624_v6 }
 0x8d9   :  { %4236 = vmatpush3.msra.mxu0 %v5624_v6 }
 0x8da   :  { %4237 = vmatprep.subr.mxu0 %v5614_v63 }
 0x8db   :  { %4238 = vmatpush3.msra.mxu0 %v5614_v63 }
 0x8dc   :  { %4239 = vmatprep.subr.mxu0 %v5618_v31 }
 0x8dd   :  { %4240 = vmatpush3.msra.mxu0 %v5618_v31 }
 0x8de   :  { %4241 = vmatprep.subr.mxu0 %v5610_v45 }
 0x8df   :  { %4242 = vmatpush3.msra.mxu0 %v5610_v45 }
 0x8e0   :  { %4243 = vmatprep.subr.mxu0 %v5612_v50 }
 0x8e1   :  { %4244 = vmatpush3.msra.mxu0 %v5612_v50 }
 0x8e2   :  { %4245 = vmatprep.subr.mxu0 %v5608_v61 }
 0x8e3   :  { %4246 = vmatpush3.msra.mxu0 %v5608_v61 }
 0x8e4   :  { %4247 = vmatprep.subr.mxu0 %v1976_v42 }
 0x8e5   :  { %4248 = vmatpush3.msra.mxu0 %v1976_v42 }
 0x8e6   :  { %4250 = vmatmul.mubr.f32.vlgmr.msra.gmra.mxu0 %v5603_v35  ;;  %4329 = vmatprep.subr.mxu0 %v4216_v9 }
 0x8e7   :  { %4252 = vmatprep.mubr.f32.mxu0 %v5622_v36  ;;  %4330 = vmatpush3.msra.mxu0 %v4216_v9 }
 0x8e8   :  { %4331 = vmatprep.subr.mxu0 %v2191_v23 }
 0x8e9   :  { %4332 = vmatpush3.msra.mxu0 %v2191_v23 }
 0x8ea   :  { %4253 = vmatmul.mubr.f32.gmra.mxu0 %v5616_v5  ;;  %4333 = vmatprep.subr.mxu0 %v4213_v41 }
 0x8eb   :  { %4255 = vmatprep.mubr.f32.mxu0 %v5634_v59  ;;  %4334 = vmatpush3.msra.mxu0 %v4213_v41 }
 0x8ec   :  { %4335 = vmatprep.subr.mxu0 %v2181_v3 }
 0x8ed   :  { %4336 = vmatpush3.msra.mxu0 %v2181_v3 }
 0x8ee   :  { %4256 = vmatmul.mubr.f32.gmra.mxu0 %v5628_v11  ;;  %4337 = vmatprep.subr.mxu0 %v4210_v37 }
 0x8ef   :  { %4258 = vmatprep.mubr.f32.mxu0 %v5647_v43  ;;  %4338 = vmatpush3.msra.mxu0 %v4210_v37 }
 0x8f0   :  { %4339 = vmatprep.subr.mxu0 %v2171_v0 }
 0x8f1   :  { %4340 = vmatpush3.msra.mxu0 %v2171_v0 }
 0x8f2   :  { %4259 = vmatmul.mubr.f32.gmra.mxu0 %v5640_v33  ;;  %4341 = vmatprep.subr.mxu0 %v4207_v57 }
 0x8f3   :  { %4261 = vmatprep.mubr.f32.mxu0 %v2161_v30  ;;  %4342 = vmatpush3.msra.mxu0 %v4207_v57 }
 0x8f4   :  { %4343 = vmatprep.subr.mxu0 %v2161_v30 }
 0x8f5   :  { %4344 = vmatpush3.msra.mxu0 %v2161_v30 }
 0x8f6   :  { %4262 = vmatmul.mubr.f32.gmra.mxu0 %v4207_v57  ;;  %4345 = vmatprep.subr.mxu0 %v5640_v33 }
 0x8f7   :  { %4264 = vmatprep.mubr.f32.mxu0 %v2171_v0  ;;  %4346 = vmatpush3.msra.mxu0 %v5640_v33 }
 0x8f8   :  { %4347 = vmatprep.subr.mxu0 %v5647_v43 }
 0x8f9   :  { %4348 = vmatpush3.msra.mxu0 %v5647_v43 }
 0x8fa   :  { %4265 = vmatmul.mubr.f32.gmra.mxu0 %v4210_v37  ;;  %4349 = vmatprep.subr.mxu0 %v5628_v11 }
 0x8fb   :  { %4267 = vmatprep.mubr.f32.mxu0 %v2181_v3  ;;  %4350 = vmatpush3.msra.mxu0 %v5628_v11 }
 0x8fc   :  { %4351 = vmatprep.subr.mxu0 %v5634_v59 }
 0x8fd   :  { %4352 = vmatpush3.msra.mxu0 %v5634_v59 }
 0x8fe   :  { %4268 = vmatmul.mubr.f32.gmra.mxu0 %v4213_v41  ;;  %4353 = vmatprep.subr.mxu0 %v5616_v5 }
 0x8ff   :  { %4270 = vmatprep.mubr.f32.mxu0 %v2191_v23  ;;  %4354 = vmatpush3.msra.mxu0 %v5616_v5 }
 0x900   :  { %4355 = vmatprep.subr.mxu0 %v5622_v36 }
 0x901   :  { %4356 = vmatpush3.msra.mxu0 %v5622_v36 }
 0x902   :  { %4271 = vmatmul.mubr.f32.gmra.mxu0 %v4216_v9  ;;  %4357 = vmatprep.subr.mxu0 %v5603_v35 }
 0x903   :  { %4358 = vmatpush3.msra.mxu0 %v5603_v35 }
 0x904   :  { %4359 = vmatprep.subr.mxu0 %v5605_v32 }
 0x905   :  { %4360 = vmatpush3.msra.mxu0 %v5605_v32 }
 0x9a6   :  { %v4251_v47 = vpop.f32.mrf.mxu0 }
 0x9a7   :  { %v2346_v7 = vsub.f32 %v5183_v51, %v4251_v47 }
 0x9a8   :  { %v2266_v34 = vpop.f32.mrf.mxu0 }
 0x9a9   :  { %v2345_v62 = vsub.f32 %v5186_v55, %v2266_v34  ;;  %v5707_v12 = vmul.f32 0.5, %v2346_v7 }
 0x9aa   :  { %v4254_v29 = vpop.f32.mrf.mxu0 }
 0x9ab   :  { %v5705_v38 = vmul.f32 0.5, %v2345_v62  ;;  %v2348_v14 = vsub.f32 %v5189_v49, %v4254_v29 }
 0x9ac   :  { %v2276_v25 = vpop.f32.mrf.mxu0 }
 0x9ad   :  { %v2347_v39 = vsub.f32 %v5193_v19, %v2276_v25  ;;  %4361 = vmatprep.mubr.f32.mxu0 %v5705_v38  ;;  %v5715_v21 = vmul.f32 0.5, %v2348_v14 }
 0x9ae   :  { %v4257_v46 = vpop.f32.mrf.mxu0  ;;  %4362 = vmatmul.mubr.f32.vlgmr.msra.gmra.mxu0 %v5707_v12 }
 0x9af   :  { %v5713_v16 = vmul.f32 0.5, %v2347_v39  ;;  %v2350_v60 = vsub.f32 %v5199_v56, %v4257_v46 }
 0x9b0   :  { %v2286_v13 = vpop.f32.mrf.mxu0 }
 0x9b1   :  { %v2349_v44 = vsub.f32 %v5205_v27, %v2286_v13  ;;  %4364 = vmatprep.mubr.f32.mxu0 %v5713_v16  ;;  %v2366_v42 = vmul.f32 0.5, %v2350_v60 }
 0x9b2   :  { %v4260_v35 = vpop.f32.mrf.mxu0  ;;  %4365 = vmatmul.mubr.f32.gmra.mxu0 %v5715_v21 }
 0x9b3   :  { %v5721_v32 = vmul.f32 0.5, %v2349_v44  ;;  %v2352_v5 = vsub.f32 %v5213_v20, %v4260_v35 }
 0x9b4   :  { %v2296_v36 = vpop.f32.mrf.mxu0 }
 0x9b5   :  { %v2351_v11 = vsub.f32 %v5219_v15, %v2296_v36  ;;  %4367 = vmatprep.mubr.f32.mxu0 %v5721_v32  ;;  %v2368_v43 = vmul.f32 0.5, %v2352_v5 }
 0x9b6   :  { %v4263_v59 = vpop.f32.mrf.mxu0  ;;  %4368 = vmatmul.mubr.f32.gmra.mxu0 %v2366_v42 }
 0x9b7   :  { %v2367_v33 = vmul.f32 0.5, %v2351_v11  ;;  %v2354_v57 = vsub.f32 %v5227_v4, %v4263_v59 }
 0x9b8   :  { %v2306_v30 = vpop.f32.mrf.mxu0 }
 0x9b9   :  { %v2353_v37 = vsub.f32 %v5233_v10, %v2306_v30  ;;  %4370 = vmatprep.mubr.f32.mxu0 %v2367_v33  ;;  %v2370_v3 = vmul.f32 0.5, %v2354_v57 }
 0x9ba   :  { %v4266_v0 = vpop.f32.mrf.mxu0  ;;  %4371 = vmatmul.mubr.f32.gmra.mxu0 %v2368_v43 }
 0x9bb   :  { %v2369_v41 = vmul.f32 0.5, %v2353_v37  ;;  %v2356_v9 = vsub.f32 %v5239_v53, %v4266_v0 }
 0x9bc   :  { %v2316_v23 = vpop.f32.mrf.mxu0 }
 0x9bd   :  { %v2355_v47 = vsub.f32 %v5243_v28, %v2316_v23  ;;  %4373 = vmatprep.mubr.f32.mxu0 %v2369_v41  ;;  %v2372_v62 = vmul.f32 0.5, %v2356_v9 }
 0x9be   :  { %v4269_v7 = vpop.f32.mrf.mxu0  ;;  %4374 = vmatmul.mubr.f32.gmra.mxu0 %v2370_v3 }
 0x9bf   :  { %v2371_v34 = vmul.f32 0.5, %v2355_v47  ;;  %v2358_v29 = vsub.f32 %v5247_v58, %v4269_v7 }
 0x9c0   :  { %v2326_v14 = vpop.f32.mrf.mxu0 }
 0x9c1   :  { %v2357_v25 = vsub.f32 %v5251_v24, %v2326_v14  ;;  %4376 = vmatprep.mubr.f32.mxu0 %v2371_v34  ;;  %v2374_v13 = vmul.f32 0.5, %v2358_v29 }
 0x9c2   :  { %v4272_v39 = vpop.f32.mrf.mxu0  ;;  %4377 = vmatmul.mubr.f32.gmra.mxu0 %v2372_v62 }
 0x9c3   :  { %v2373_v46 = vmul.f32 0.5, %v2357_v25  ;;  %v2360_v60 = vsub.f32 %v5255_v48, %v4272_v39 }
 0x9c4   :  { %v2336_v44 = vpop.f32.mrf.mxu0 }
 0x9c5   :  { %v2376_v35 = vmul.f32 0.5, %v2360_v60  ;;  %v2359_v5 = vsub.f32 %v5259_v2, %v2336_v44  ;;  %4379 = vmatprep.mubr.f32.mxu0 %v2373_v46 }
 0x9c6   :  { %4380 = vmatmul.mubr.f32.gmra.mxu0 %v2374_v13 }
 0x9c7   :  { %v2375_v36 = vmul.f32 0.5, %v2359_v5  ;;  %4273 = vmatprep.subr.mxu1 %v2376_v35 }
 0x9c8   :  { %4274 = vmatpush3.msra.mxu1 %v2376_v35 }
 0x9c9   :  { %4275 = vmatprep.subr.mxu1 %v2375_v36  ;;  %4382 = vmatprep.mubr.f32.mxu0 %v2375_v36 }
 0x9ca   :  { %4276 = vmatpush3.msra.mxu1 %v2375_v36  ;;  %4383 = vmatmul.mubr.f32.gmra.mxu0 %v2376_v35 }
 0x9cb   :  { %4277 = vmatprep.subr.mxu1 %v2374_v13 }
 0x9cc   :  { %4278 = vmatpush3.msra.mxu1 %v2374_v13 }
 0x9cd   :  { %4279 = vmatprep.subr.mxu1 %v2373_v46 }
 0x9ce   :  { %4280 = vmatpush3.msra.mxu1 %v2373_v46 }
 0x9cf   :  { %4281 = vmatprep.subr.mxu1 %v2372_v62 }
 0x9d0   :  { %4282 = vmatpush3.msra.mxu1 %v2372_v62 }
 0x9d1   :  { %4283 = vmatprep.subr.mxu1 %v2371_v34 }
 0x9d2   :  { %4284 = vmatpush3.msra.mxu1 %v2371_v34 }
 0x9d3   :  { %4285 = vmatprep.subr.mxu1 %v2370_v3 }
 0x9d4   :  { %4286 = vmatpush3.msra.mxu1 %v2370_v3 }
 0x9d5   :  { %4287 = vmatprep.subr.mxu1 %v2369_v41 }
 0x9d6   :  { %4288 = vmatpush3.msra.mxu1 %v2369_v41 }
 0x9d7   :  { %4289 = vmatprep.subr.mxu1 %v2368_v43 }
 0x9d8   :  { %4290 = vmatpush3.msra.mxu1 %v2368_v43 }
 0x9d9   :  { %4291 = vmatprep.subr.mxu1 %v2367_v33 }
 0x9da   :  { %4292 = vmatpush3.msra.mxu1 %v2367_v33 }
 0x9db   :  { %4293 = vmatprep.subr.mxu1 %v2366_v42 }
 0x9dc   :  { %4294 = vmatpush3.msra.mxu1 %v2366_v42 }
 0x9dd   :  { %4295 = vmatprep.subr.mxu1 %v5721_v32 }
 0x9de   :  { %4296 = vmatpush3.msra.mxu1 %v5721_v32 }
 0x9df   :  { %4297 = vmatprep.subr.mxu1 %v5715_v21 }
 0x9e0   :  { %4298 = vmatpush3.msra.mxu1 %v5715_v21 }
 0x9e1   :  { %4299 = vmatprep.subr.mxu1 %v5713_v16 }
 0x9e2   :  { %4300 = vmatpush3.msra.mxu1 %v5713_v16 }
 0x9e3   :  { %4301 = vmatprep.subr.mxu1 %v5707_v12 }
 0x9e4   :  { %4302 = vmatpush3.msra.mxu1 %v5707_v12 }
 0x9e5   :  { %4303 = vmatprep.subr.mxu1 %v5705_v38 }
 0x9e6   :  { %4304 = vmatpush3.msra.mxu1 %v5705_v38 }
 0x9e7   :  { %4306 = vmatmul.mubr.f32.vlgmr.msra.gmra.mxu1 %v5608_v61 }
 0x9e8   :  { %4308 = vmatprep.mubr.f32.mxu1 %v5612_v50 }
 0x9eb   :  { %4309 = vmatmul.mubr.f32.gmra.mxu1 %v5610_v45 }
 0x9ec   :  { %4311 = vmatprep.mubr.f32.mxu1 %v5618_v31 }
 0x9ef   :  { %4312 = vmatmul.mubr.f32.gmra.mxu1 %v5614_v63 }
 0x9f0   :  { %4314 = vmatprep.mubr.f32.mxu1 %v5624_v6 }
 0x9f3   :  { %4315 = vmatmul.mubr.f32.gmra.mxu1 %v5620_v18 }
 0x9f4   :  { %4317 = vmatprep.mubr.f32.mxu1 %v5630_v40 }
 0x9f7   :  { %4318 = vmatmul.mubr.f32.gmra.mxu1 %v5626_v8 }
 0x9f8   :  { %4320 = vmatprep.mubr.f32.mxu1 %v5636_v52 }
 0x9fb   :  { %4321 = vmatmul.mubr.f32.gmra.mxu1 %v5632_v1 }
 0x9fc   :  { %4323 = vmatprep.mubr.f32.mxu1 %v5642_v17 }
 0x9ff   :  { %4324 = vmatmul.mubr.f32.gmra.mxu1 %v5638_v26 }
 0xa00   :  { %4326 = vmatprep.mubr.f32.mxu1 %v5649_v22 }
 0xa03   :  { %4327 = vmatmul.mubr.f32.gmra.mxu1 %v5644_v54 }
 0xa6e   :  { %v5759_v61 = vpop.f32.mrf.mxu0 }
 0xa70   :  { %v2588_v45 = vpop.f32.mrf.mxu0 }
 0xa71   :  { %4417 = vmatprep.mubr.f32.mxu1 %v2588_v45 }
 0xa72   :  { %v5761_v50 = vpop.f32.mrf.mxu0 }
 0xa74   :  { %v5763_v63 = vpop.f32.mrf.mxu0 }
 0xa76   :  { %v5765_v31 = vpop.f32.mrf.mxu0 }
 0xa78   :  { %v5767_v18 = vpop.f32.mrf.mxu0 }
 0xa7a   :  { %v5769_v6 = vpop.f32.mrf.mxu0 }
 0xa7c   :  { %v5771_v8 = vpop.f32.mrf.mxu0 }
 0xa7e   :  { %v5773_v40 = vpop.f32.mrf.mxu0 }
 0xa80   :  { %v5775_v1 = vpop.f32.mrf.mxu0 }
 0xa82   :  { %v5777_v52 = vpop.f32.mrf.mxu0 }
 0xa84   :  { %v5779_v26 = vpop.f32.mrf.mxu0 }
 0xa86   :  { %v5781_v17 = vpop.f32.mrf.mxu0 }
 0xa88   :  { %v5783_v54 = vpop.f32.mrf.mxu0 }
 0xa8a   :  { %v5785_v22 = vpop.f32.mrf.mxu0 }
 0xa8b   :  { %4441 = vmatprep.subr.mxu0 %v5785_v22 }
 0xa8c   :  { %v5788_v38 = vpop.f32.mrf.mxu0  ;;  %4442 = vmatpush3.msra.mxu0 %v5785_v22 }
 0xa8d   :  { %4443 = vmatprep.subr.mxu0 %v5788_v38 }
 0xa8e   :  { %4444 = vmatpush3.msra.mxu0 %v5788_v38 }
 0xa8f   :  { %4445 = vmatprep.subr.mxu0 %v5781_v17 }
 0xa90   :  { %4446 = vmatpush3.msra.mxu0 %v5781_v17 }
 0xa91   :  { %4447 = vmatprep.subr.mxu0 %v5783_v54 }
 0xa92   :  { %4448 = vmatpush3.msra.mxu0 %v5783_v54 }
 0xa93   :  { %4449 = vmatprep.subr.mxu0 %v5777_v52 }
 0xa94   :  { %4450 = vmatpush3.msra.mxu0 %v5777_v52 }
 0xa95   :  { %4451 = vmatprep.subr.mxu0 %v5779_v26 }
 0xa96   :  { %4452 = vmatpush3.msra.mxu0 %v5779_v26 }
 0xa97   :  { %4453 = vmatprep.subr.mxu0 %v5773_v40 }
 0xa98   :  { %4454 = vmatpush3.msra.mxu0 %v5773_v40 }
 0xa99   :  { %4455 = vmatprep.subr.mxu0 %v5775_v1 }
 0xa9a   :  { %4456 = vmatpush3.msra.mxu0 %v5775_v1 }
 0xa9b   :  { %4457 = vmatprep.subr.mxu0 %v5769_v6 }
 0xa9c   :  { %4458 = vmatpush3.msra.mxu0 %v5769_v6 }
 0xa9d   :  { %4459 = vmatprep.subr.mxu0 %v5771_v8 }
 0xa9e   :  { %4460 = vmatpush3.msra.mxu0 %v5771_v8 }
 0xa9f   :  { %4461 = vmatprep.subr.mxu0 %v5765_v31 }
 0xaa0   :  { %4462 = vmatpush3.msra.mxu0 %v5765_v31 }
 0xaa1   :  { %4463 = vmatprep.subr.mxu0 %v5767_v18 }
 0xaa2   :  { %4464 = vmatpush3.msra.mxu0 %v5767_v18 }
 0xaa3   :  { %4465 = vmatprep.subr.mxu0 %v5761_v50 }
 0xaa4   :  { %4466 = vmatpush3.msra.mxu0 %v5761_v50 }
 0xaa5   :  { %4467 = vmatprep.subr.mxu0 %v5763_v63 }
 0xaa6   :  { %4468 = vmatpush3.msra.mxu0 %v5763_v63 }
 0xaa7   :  { %v4307_v12 = vpop.f32.mrf.mxu1  ;;  %4469 = vmatprep.subr.mxu0 %v5759_v61 }
 0xaa8   :  { %4470 = vmatpush3.msra.mxu0 %v5759_v61 }
 0xaa9   :  { %v2443_v16 = vpop.f32.mrf.mxu1  ;;  %4471 = vmatprep.subr.mxu0 %v2588_v45 }
 0xaaa   :  { %4472 = vmatpush3.msra.mxu0 %v2588_v45 }
 0xaab   :  { %v4310_v21 = vpop.f32.mrf.mxu1 }
 0xaad   :  { %v2453_v32 = vpop.f32.mrf.mxu1 }
 0xaaf   :  { %v4313_v42 = vpop.f32.mrf.mxu1 }
 0xab1   :  { %v2463_v11 = vpop.f32.mrf.mxu1 }
 0xab3   :  { %v4316_v59 = vpop.f32.mrf.mxu1 }
 0xab5   :  { %v2473_v33 = vpop.f32.mrf.mxu1 }
 0xab7   :  { %v4319_v43 = vpop.f32.mrf.mxu1 }
 0xab9   :  { %v2483_v57 = vpop.f32.mrf.mxu1 }
 0xabb   :  { %v4322_v30 = vpop.f32.mrf.mxu1 }
 0xabd   :  { %v2493_v37 = vpop.f32.mrf.mxu1 }
 0xabf   :  { %v4325_v0 = vpop.f32.mrf.mxu1 }
 0xac1   :  { %v2503_v41 = vpop.f32.mrf.mxu1 }
 0xac3   :  { %v4328_v3 = vpop.f32.mrf.mxu1 }
 0xac4   :  { %4385 = vmatprep.subr.mxu1 %v4328_v3 }
 0xac5   :  { %v2513_v9 = vpop.f32.mrf.mxu1  ;;  %4386 = vmatpush3.msra.mxu1 %v4328_v3 }
 0xac6   :  { %4387 = vmatprep.subr.mxu1 %v2513_v9 }
 0xac7   :  { %4388 = vmatpush3.msra.mxu1 %v2513_v9 }
 0xac8   :  { %4389 = vmatprep.subr.mxu1 %v4325_v0 }
 0xac9   :  { %4390 = vmatpush3.msra.mxu1 %v4325_v0 }
 0xaca   :  { %4391 = vmatprep.subr.mxu1 %v2503_v41 }
 0xacb   :  { %4392 = vmatpush3.msra.mxu1 %v2503_v41 }
 0xacc   :  { %4393 = vmatprep.subr.mxu1 %v4322_v30 }
 0xacd   :  { %4394 = vmatpush3.msra.mxu1 %v4322_v30 }
 0xace   :  { %4395 = vmatprep.subr.mxu1 %v2493_v37 }
 0xacf   :  { %4396 = vmatpush3.msra.mxu1 %v2493_v37 }
 0xad0   :  { %4397 = vmatprep.subr.mxu1 %v4319_v43 }
 0xad1   :  { %4398 = vmatpush3.msra.mxu1 %v4319_v43 }
 0xad2   :  { %4399 = vmatprep.subr.mxu1 %v2483_v57 }
 0xad3   :  { %4400 = vmatpush3.msra.mxu1 %v2483_v57 }
 0xad4   :  { %4401 = vmatprep.subr.mxu1 %v4316_v59 }
 0xad5   :  { %4402 = vmatpush3.msra.mxu1 %v4316_v59 }
 0xad6   :  { %4403 = vmatprep.subr.mxu1 %v2473_v33 }
 0xad7   :  { %4404 = vmatpush3.msra.mxu1 %v2473_v33 }
 0xad8   :  { %4405 = vmatprep.subr.mxu1 %v4313_v42 }
 0xad9   :  { %4406 = vmatpush3.msra.mxu1 %v4313_v42 }
 0xada   :  { %4407 = vmatprep.subr.mxu1 %v2463_v11 }
 0xadb   :  { %4408 = vmatpush3.msra.mxu1 %v2463_v11 }
 0xadc   :  { %4409 = vmatprep.subr.mxu1 %v4310_v21 }
 0xadd   :  { %4410 = vmatpush3.msra.mxu1 %v4310_v21 }
 0xade   :  { %4411 = vmatprep.subr.mxu1 %v2453_v32 }
 0xadf   :  { %4412 = vmatpush3.msra.mxu1 %v2453_v32 }
 0xae0   :  { %4413 = vmatprep.subr.mxu1 %v4307_v12 }
 0xae1   :  { %4414 = vmatpush3.msra.mxu1 %v4307_v12 }
 0xae2   :  { %4415 = vmatprep.subr.mxu1 %v2443_v16 }
 0xae3   :  { %4416 = vmatpush3.msra.mxu1 %v2443_v16 }
 0xae4   :  { %4418 = vmatmul.mubr.f32.vlgmr.msra.gmra.mxu1 %v5759_v61 }
 0xae5   :  { %4420 = vmatprep.mubr.f32.mxu1 %v5763_v63 }
 0xae8   :  { %4421 = vmatmul.mubr.f32.gmra.mxu1 %v5761_v50 }
 0xae9   :  { %4423 = vmatprep.mubr.f32.mxu1 %v5767_v18 }
 0xaec   :  { %4424 = vmatmul.mubr.f32.gmra.mxu1 %v5765_v31 }
 0xaed   :  { %4426 = vmatprep.mubr.f32.mxu1 %v5771_v8 }
 0xaf0   :  { %4427 = vmatmul.mubr.f32.gmra.mxu1 %v5769_v6 }
 0xaf1   :  { %4429 = vmatprep.mubr.f32.mxu1 %v5775_v1 }
 0xaf4   :  { %4430 = vmatmul.mubr.f32.gmra.mxu1 %v5773_v40 }
 0xaf5   :  { %4432 = vmatprep.mubr.f32.mxu1 %v5779_v26 }
 0xaf8   :  { %4433 = vmatmul.mubr.f32.gmra.mxu1 %v5777_v52 }
 0xaf9   :  { %4435 = vmatprep.mubr.f32.mxu1 %v5783_v54 }
 0xafc   :  { %4436 = vmatmul.mubr.f32.gmra.mxu1 %v5781_v17 }
 0xafd   :  { %4438 = vmatprep.mubr.f32.mxu1 %v5788_v38 }
 0xb00   :  { %4439 = vmatmul.mubr.f32.gmra.mxu1 %v5785_v22 }
 0xba4   :  { %v4419_v23 = vpop.f32.mrf.mxu1 }
 0xba5   :  { %v2813_v47 = vsub.f32 %v5183_v51, %v4419_v23 }
 0xba6   :  { %v2733_v7 = vpop.f32.mrf.mxu1 }
 0xba7   :  { %v2812_v34 = vsub.f32 %v5186_v55, %v2733_v7  ;;  %v2829_v14 = vmul.f32 0.5, %v2813_v47 }
 0xba8   :  { %v4422_v62 = vpop.f32.mrf.mxu1 }
 0xba9   :  { %v2828_v29 = vmul.f32 0.5, %v2812_v34  ;;  %v2815_v25 = vsub.f32 %v5189_v49, %v4422_v62 }
 0xbaa   :  { %v2743_v39 = vpop.f32.mrf.mxu1 }
 0xbab   :  { %v2814_v46 = vsub.f32 %v5193_v19, %v2743_v39  ;;  %4473 = vmatprep.mubr.f32.mxu0 %v2828_v29  ;;  %v2831_v44 = vmul.f32 0.5, %v2815_v25 }
 0xbac   :  { %v4425_v60 = vpop.f32.mrf.mxu1  ;;  %4474 = vmatmul.mubr.f32.vlgmr.msra.gmra.mxu0 %v2829_v14 }
 0xbad   :  { %v2830_v13 = vmul.f32 0.5, %v2814_v46  ;;  %v2817_v35 = vsub.f32 %v5199_v56, %v4425_v60 }
 0xbae   :  { %v2753_v5 = vpop.f32.mrf.mxu1 }
 0xbaf   :  { %v2816_v51 = vsub.f32 %v5205_v27, %v2753_v5  ;;  %4476 = vmatprep.mubr.f32.mxu0 %v2830_v13  ;;  %v2833_v61 = vmul.f32 0.5, %v2817_v35 }
 0xbb0   :  { %v4428_v55 = vpop.f32.mrf.mxu1  ;;  %4477 = vmatmul.mubr.f32.gmra.mxu0 %v2831_v44 }
 0xbb1   :  { %v2832_v36 = vmul.f32 0.5, %v2816_v51  ;;  %v2819_v49 = vsub.f32 %v5213_v20, %v4428_v55 }
 0xbb2   :  { %v2763_v45 = vpop.f32.mrf.mxu1 }
 0xbb3   :  { %v2818_v19 = vsub.f32 %v5219_v15, %v2763_v45  ;;  %4479 = vmatprep.mubr.f32.mxu0 %v2832_v36  ;;  %v2835_v31 = vmul.f32 0.5, %v2819_v49 }
 0xbb4   :  { %v4431_v50 = vpop.f32.mrf.mxu1  ;;  %4480 = vmatmul.mubr.f32.gmra.mxu0 %v2833_v61 }
 0xbb5   :  { %v2834_v63 = vmul.f32 0.5, %v2818_v19  ;;  %v2821_v56 = vsub.f32 %v5227_v4, %v4431_v50 }
 0xbb6   :  { %v2773_v18 = vpop.f32.mrf.mxu1 }
 0xbb7   :  { %v2820_v27 = vsub.f32 %v5233_v10, %v2773_v18  ;;  %4482 = vmatprep.mubr.f32.mxu0 %v2834_v63  ;;  %v2837_v40 = vmul.f32 0.5, %v2821_v56 }
 0xbb8   :  { %v4434_v6 = vpop.f32.mrf.mxu1  ;;  %4483 = vmatmul.mubr.f32.gmra.mxu0 %v2835_v31 }
 0xbb9   :  { %v2836_v8 = vmul.f32 0.5, %v2820_v27  ;;  %v2823_v20 = vsub.f32 %v5239_v53, %v4434_v6 }
 0xbba   :  { %v2783_v1 = vpop.f32.mrf.mxu1 }
 0xbbb   :  { %v2822_v15 = vsub.f32 %v5243_v28, %v2783_v1  ;;  %4485 = vmatprep.mubr.f32.mxu0 %v2836_v8  ;;  %v2839_v17 = vmul.f32 0.5, %v2823_v20 }
 0xbbc   :  { %v4437_v52 = vpop.f32.mrf.mxu1  ;;  %4486 = vmatmul.mubr.f32.gmra.mxu0 %v2837_v40 }
 0xbbd   :  { %v2838_v26 = vmul.f32 0.5, %v2822_v15  ;;  %v2825_v4 = vsub.f32 %v5247_v58, %v4437_v52 }
 0xbbe   :  { %v2793_v54 = vpop.f32.mrf.mxu1 }
 0xbbf   :  { %v2824_v10 = vsub.f32 %v5251_v24, %v2793_v54  ;;  %4488 = vmatprep.mubr.f32.mxu0 %v2838_v26  ;;  %v2841_v12 = vmul.f32 0.5, %v2825_v4 }
 0xbc0   :  { %v4440_v22 = vpop.f32.mrf.mxu1  ;;  %4489 = vmatmul.mubr.f32.gmra.mxu0 %v2839_v17 }
 0xbc1   :  { %v2840_v38 = vmul.f32 0.5, %v2824_v10  ;;  %v2827_v53 = vsub.f32 %v5255_v48, %v4440_v22 }
 0xbc2   :  { %v2803_v16 = vpop.f32.mrf.mxu1 }
 0xbc3   :  { %v2826_v28 = vsub.f32 %v5259_v2, %v2803_v16  ;;  %4491 = vmatprep.mubr.f32.mxu0 %v2840_v38  ;;  %v2843_v32 = vmul.f32 0.5, %v2827_v53 }
 0xbc4   :  { %4492 = vmatmul.mubr.f32.gmra.mxu0 %v2841_v12 }
 0xbc5   :  { %v2842_v21 = vmul.f32 0.5, %v2826_v28 }
 0xbc7   :  { %4494 = vmatprep.mubr.f32.mxu0 %v2842_v21 }
 0xbc8   :  { %4495 = vmatmul.mubr.f32.gmra.mxu0 %v2843_v32 }
 0xbc9   :  { %4550 = shalt.err (!%p4547_p9)
}
 0xbca   :  { %3058 = dma.vmem_to_hbm [thread:$0]  %s3056_s21, 16, %s5884_s1, [#allocation6]  }
 0xbcb   :  { %s4502_s26 = spop %4501  ;;  %s4611_s1 = smov [#allocation8]  }
 0xbcc   :  { %v2998_v58 = vstv %s4502_s26  ;;  %s3064_s27 = sshll.u32 %s4611_s1, 4  ;;  %s4612_s28 = smov [#allocation10]   ;;  %s3065_s27 = int_to_ptr.vmem [resolvable:$true] %s3064_s27 }
 0xbcd   :  { %4517 = vrcp.f32 %v2998_v58  ;;  %s3076_s29 = sshll.u32 %s4612_s28, 4  ;;  %s4559_s30 = scalar_lea.vmem %s3065_s27, 2048  ;;  %s3077_s29 = int_to_ptr.vmem [resolvable:$true] %s3076_s29 }
 0xbce   :  { %p4560_p10 = scmp.ne.s32.totalorder %s3065_s27, %s4559_s30  ;;  %p4564_p11 = scmp.lt.s32.totalorder %s3065_s27, %s3065_s27 }
 0xbcf   :  { %p4565_p12 = scmp.lt.s32.totalorder %s4559_s30, %s4559_s30 }
 0xbd1   :  { %p4566_p13 = por %p4565_p12, %p4564_p11 }
 0xbd3   :  { %p4567_p0 = pnand %p4566_p13, %p4560_p10 }
 0xbda   :  { %v5853_v24 = vpop.eup %4517 }
 0xc6c   :  { %v4475_v48 = vpop.f32.mrf.mxu0 }
 0xc6d   :  { %v3001_v2 = vmul.f32 %v5853_v24, %v4475_v48 }
 0xc6e   :  { %v2910_v42 = vpop.f32.mrf.mxu0 }
 0xc6f   :  { %3018 = vst [vmem:[#allocation8 + $0x8] sm:$0xff] %v3001_v2  ;;  %3034 = vst [vmem:[#allocation10 + $0x8] sm:$0xff] %v3001_v2  ;;  %v3000_v11 = vmul.f32 %v5853_v24, %v2910_v42 }
 0xc70   :  { %v4478_v59 = vpop.f32.mrf.mxu0 }
 0xc71   :  { %3017 = vst [vmem:[#allocation8] sm:$0xff] %v3000_v11  ;;  %3033 = vst [vmem:[#allocation10] sm:$0xff] %v3000_v11  ;;  %v3003_v33 = vmul.f32 %v5853_v24, %v4478_v59 }
 0xc72   :  { %v2920_v43 = vpop.f32.mrf.mxu0 }
 0xc73   :  { %3020 = vst [vmem:[#allocation8 + $0x18] sm:$0xff] %v3003_v33  ;;  %3036 = vst [vmem:[#allocation10 + $0x18] sm:$0xff] %v3003_v33  ;;  %v3002_v57 = vmul.f32 %v5853_v24, %v2920_v43 }
 0xc74   :  { %v4481_v30 = vpop.f32.mrf.mxu0 }
 0xc75   :  { %3019 = vst [vmem:[#allocation8 + $0x10] sm:$0xff] %v3002_v57  ;;  %3035 = vst [vmem:[#allocation10 + $0x10] sm:$0xff] %v3002_v57  ;;  %v3005_v37 = vmul.f32 %v5853_v24, %v4481_v30 }
 0xc76   :  { %v2930_v0 = vpop.f32.mrf.mxu0 }
 0xc77   :  { %3022 = vst [vmem:[#allocation8 + $0x28] sm:$0xff] %v3005_v37  ;;  %3038 = vst [vmem:[#allocation10 + $0x28] sm:$0xff] %v3005_v37  ;;  %v3004_v41 = vmul.f32 %v5853_v24, %v2930_v0 }
 0xc78   :  { %v4484_v3 = vpop.f32.mrf.mxu0 }
 0xc79   :  { %3021 = vst [vmem:[#allocation8 + $0x20] sm:$0xff] %v3004_v41  ;;  %3037 = vst [vmem:[#allocation10 + $0x20] sm:$0xff] %v3004_v41  ;;  %v3007_v9 = vmul.f32 %v5853_v24, %v4484_v3 }
 0xc7a   :  { %v2940_v23 = vpop.f32.mrf.mxu0 }
 0xc7b   :  { %3024 = vst [vmem:[#allocation8 + $0x38] sm:$0xff] %v3007_v9  ;;  %3040 = vst [vmem:[#allocation10 + $0x38] sm:$0xff] %v3007_v9  ;;  %v3006_v47 = vmul.f32 %v5853_v24, %v2940_v23 }
 0xc7c   :  { %v4487_v7 = vpop.f32.mrf.mxu0 }
 0xc7d   :  { %3023 = vst [vmem:[#allocation8 + $0x30] sm:$0xff] %v3006_v47  ;;  %3039 = vst [vmem:[#allocation10 + $0x30] sm:$0xff] %v3006_v47  ;;  %v3009_v34 = vmul.f32 %v5853_v24, %v4487_v7 }
 0xc7e   :  { %v2950_v62 = vpop.f32.mrf.mxu0 }
 0xc7f   :  { %3026 = vst [vmem:[#allocation8 + $0x48] sm:$0xff] %v3009_v34  ;;  %3042 = vst [vmem:[#allocation10 + $0x48] sm:$0xff] %v3009_v34  ;;  %v3008_v29 = vmul.f32 %v5853_v24, %v2950_v62 }
 0xc80   :  { %v4490_v14 = vpop.f32.mrf.mxu0 }
 0xc81   :  { %3025 = vst [vmem:[#allocation8 + $0x40] sm:$0xff] %v3008_v29  ;;  %3041 = vst [vmem:[#allocation10 + $0x40] sm:$0xff] %v3008_v29  ;;  %v3011_v25 = vmul.f32 %v5853_v24, %v4490_v14 }
 0xc82   :  { %v2960_v39 = vpop.f32.mrf.mxu0 }
 0xc83   :  { %3028 = vst [vmem:[#allocation8 + $0x58] sm:$0xff] %v3011_v25  ;;  %3044 = vst [vmem:[#allocation10 + $0x58] sm:$0xff] %v3011_v25  ;;  %v3010_v46 = vmul.f32 %v5853_v24, %v2960_v39 }
 0xc84   :  { %v4493_v60 = vpop.f32.mrf.mxu0 }
 0xc85   :  { %3027 = vst [vmem:[#allocation8 + $0x50] sm:$0xff] %v3010_v46  ;;  %3043 = vst [vmem:[#allocation10 + $0x50] sm:$0xff] %v3010_v46  ;;  %v3013_v13 = vmul.f32 %v5853_v24, %v4493_v60 }
 0xc86   :  { %v2970_v44 = vpop.f32.mrf.mxu0 }
 0xc87   :  { %3030 = vst [vmem:[#allocation8 + $0x68] sm:$0xff] %v3013_v13  ;;  %3046 = vst [vmem:[#allocation10 + $0x68] sm:$0xff] %v3013_v13  ;;  %v3012_v35 = vmul.f32 %v5853_v24, %v2970_v44 }
 0xc88   :  { %v4496_v5 = vpop.f32.mrf.mxu0 }
 0xc89   :  { %3029 = vst [vmem:[#allocation8 + $0x60] sm:$0xff] %v3012_v35  ;;  %3045 = vst [vmem:[#allocation10 + $0x60] sm:$0xff] %v3012_v35  ;;  %v3015_v51 = vmul.f32 %v5853_v24, %v4496_v5 }
 0xc8a   :  { %v2980_v55 = vpop.f32.mrf.mxu0 }
 0xc8b   :  { %3032 = vst [vmem:[#allocation8 + $0x78] sm:$0xff] %v3015_v51  ;;  %3048 = vst [vmem:[#allocation10 + $0x78] sm:$0xff] %v3015_v51  ;;  %v3014_v36 = vmul.f32 %v5853_v24, %v2980_v55 }
 0xc8d   :  { %3031 = vst [vmem:[#allocation8 + $0x70] sm:$0xff] %v3014_v36  ;;  %3047 = vst [vmem:[#allocation10 + $0x70] sm:$0xff] %v3014_v36 }
 0xc8e   :  { %4570 = shalt.err (!%p4567_p0)
}
 0xc8f   :  { %3070 = dma.vmem_to_hbm [thread:$0]  %s3065_s27, 2048, %s5885_s2, [#allocation9], %s4606_s15, %s4606_s15, %s4607_s16  }
 0xc90   :  { %s4579_s6 = scalar_lea.vmem %s3077_s29, 2048  ;;  %p4584_p2 = scmp.lt.s32.totalorder %s3077_s29, %s3077_s29 }
 0xc91   :  { %p4580_p1 = scmp.ne.s32.totalorder %s3077_s29, %s4579_s6  ;;  %p4585_p3 = scmp.lt.s32.totalorder %s4579_s6, %s4579_s6 }
 0xc93   :  { %p4586_p4 = por %p4585_p3, %p4584_p2 }
 0xc95   :  { %p4587_p5 = pnand %p4586_p4, %p4580_p1 }
 0xc97   :  { %4590 = shalt.err (!%p4587_p5)
}
 0xc98   :  { %3082 = dma.vmem_to_hbm [thread:$0]  %s3077_s29, 2048, %s5886_s3, [#allocation9], %s4606_s15, %s4606_s15, %s4607_s16  }
 0xc99   :  { %4601 = dma.done.wait [#allocation6], 16  }
 0xc9a   :  { %4602 = vsyncadd [#allocation6], 4294967280 }
 0xc9b   :  { %4603 = dma.done.wait [#allocation9], 4096  }
 0xc9c   :  { %4604 = vsyncadd [#allocation9], 4294963200 }
 0xc9d   :  { %3092 = vsyncpa [#allocation5], 1 }
 0xc9e   :  { %3093 = vsyncpa [#allocation6], 1 }
 0xc9f   :  { %3094 = vsyncpa [#allocation9], 1 }

</bundles_post_ra>
